<compile_context>
chip_gen: v5e
topology: v5e:2x2
jax: 0.10.0
libtpu: 0.0.40
codegen_flags: <defaults>
</compile_context>

<pallas_src>
import functools

import jax
import jax.numpy as jnp
from jax.experimental import pallas as pl
from jax.experimental.pallas import tpu as pltpu


def _mlp_softmax_kernel(x_ref, w1_ref, w2_ref, b2_ref, w3_ref, o_ref, *, chunk_rows):
    cs = chunk_rows
    n_chunks = x_ref.shape[0] // cs  # static: block rows are a multiple of cs

    # Tiny weights (<3 KB): load once per grid step, VMEM/vreg resident.
    w1_r0 = w1_ref[0:1, :]            # (1, 10) f32
    w1_r1 = w1_ref[1:2, :]            # (1, 10) f32
    w2 = w2_ref[...]                  # (10, 50) bf16
    b2 = b2_ref[...]                  # (1, 50)  f32
    w3 = w3_ref[...]                  # (50, 4)  bf16

    @pl.loop(0, n_chunks)
    def _(c):
        off = pl.multiple_of(c * cs, cs)
        x_c = x_ref[pl.ds(off, cs), :]                          # (cs, 2) f32

        # fc1: Linear(2, 10, bias=False) + ReLU on the VPU (K=2 is far too small
        # to be worth an MXU round trip): two broadcast-mults + add.
        h1 = jnp.maximum(x_c[:, 0:1] * w1_r0 + x_c[:, 1:2] * w1_r1, 0.0)  # (cs, 10)

        # fc2: Linear(10, 50) + bias + ReLU on the MXU; bf16 inputs, f32 accumulate.
        h2 = jnp.dot(h1.astype(jnp.bfloat16), w2,
                     preferred_element_type=jnp.float32)        # (cs, 50)
        h2 = jnp.maximum(h2 + b2, 0.0)

        # fc3: Linear(50, 4, bias=False) on the MXU.
        logits = jnp.dot(h2.astype(jnp.bfloat16), w3,
                         preferred_element_type=jnp.float32)    # (cs, 4)

        # Numerically stable, *exactly* normalized softmax over the class axis.
        m = jnp.max(logits, axis=-1, keepdims=True)
        e = jnp.exp(logits - m)
        probs = e / jnp.sum(e, axis=-1, keepdims=True)
        o_ref[pl.ds(off, cs), :] = probs


@functools.partial(jax.jit, static_argnames=("block_rows", "chunk_rows"))
def net_forward(x, w1, w2, b2, w3, *, block_rows=8192, chunk_rows=256):
    """Forward pass of Net.

    x:  (B, 2) float32
    w1: (10, 2), w2: (50, 10), b2: (50,), w3: (4, 50)   (PyTorch (out, in) layout)
    returns (B, 4) softmax probabilities (float32).
    """
    B = x.shape[0]

    # One-time, tiny (<3 KB) weight re-layout: (out, in) -> (in, out); MXU operands
    # in bf16, everything else stays f32.  This is parameter plumbing, not per-call
    # activation traffic.
    w1t = w1.T.astype(jnp.float32)            # (2, 10)
    w2t = w2.T.astype(jnp.bfloat16)           # (10, 50)
    w3t = w3.T.astype(jnp.bfloat16)           # (50, 4)
    b2r = b2.reshape(1, -1).astype(jnp.float32)  # (1, 50)

    # Round the batch up to the chunk so the in-kernel loop has a whole number of
    # chunks.  This only copies when B is not already chunk-aligned (tiny / ragged
    # batches); large aligned batches flow through with zero extra HBM traffic.
    cs = chunk_rows
    b_pad = ((B + cs - 1) // cs) * cs
    xp = x if b_pad == B else jnp.pad(x, ((0, b_pad - B), (0, 0)))

    tb = min(block_rows, b_pad)               # rows per grid step (multiple of cs)
    assert tb % cs == 0
    grid = (pl.cdiv(b_pad, tb),)              # trailing partial block (if any) is
                                              # handled by masked boundary DMA;
                                              # garbage rows never leak (softmax is
                                              # row-local, OOB writes are dropped).

    out = pl.pallas_call(
        functools.partial(_mlp_softmax_kernel, chunk_rows=cs),
        out_shape=jax.ShapeDtypeStruct((b_pad, 4), jnp.float32),
        grid=grid,
        in_specs=[
            # Activations: big batch slabs in native (rows, features) layout.
            pl.BlockSpec((tb, 2), lambda i: (i, 0)),
            # Weights / bias: constant index maps -> stay VMEM-resident.
            pl.BlockSpec(w1t.shape, lambda i: (0, 0)),
            pl.BlockSpec(w2t.shape, lambda i: (0, 0)),
            pl.BlockSpec(b2r.shape, lambda i: (0, 0)),
            pl.BlockSpec(w3t.shape, lambda i: (0, 0)),
        ],
        out_specs=pl.BlockSpec((tb, 4), lambda i: (i, 0)),
        compiler_params=pltpu.CompilerParams(
            dimension_semantics=("parallel",),      # shard batch blocks across cores
            vmem_limit_bytes=32 * 1024 * 1024,      # headroom for narrow-minor tiles
        ),
    )(xp, w1t, w2t, b2r, w3t)

    return out if b_pad == B else out[:B]


def init_params(key):
    """Deterministic init mimicking PyTorch nn.Linear default:
    U(-1/sqrt(fan_in), 1/sqrt(fan_in)); weights kept in (out, in) layout."""
    k1, k2, k3, k4 = jax.random.split(key, 4)

    def lin_w(k, fan_in, fan_out):
        bound = 1.0 / jnp.sqrt(jnp.float32(fan_in))
        return jax.random.uniform(k, (fan_out, fan_in), jnp.float32, -bound, bound)

    w1 = lin_w(k1, 2, 10)                     # fc1: Linear(2, 10, bias=False)
    w2 = lin_w(k2, 10, 50)                    # fc2: Linear(10, 50, bias=True)
    b2 = jax.random.uniform(k3, (50,), jnp.float32,
                            -1.0 / jnp.sqrt(10.0), 1.0 / jnp.sqrt(10.0))
    w3 = lin_w(k4, 50, 4)                     # fc3: Linear(50, 4, bias=False)
    return w1, w2, b2, w3


if __name__ == "__main__":
    key = jax.random.PRNGKey(0)
    pkey, xkey, xkey2 = jax.random.split(key, 3)
    w1, w2, b2, w3 = init_params(pkey)

    def reference(xv):
        h = jnp.maximum(xv @ w1.T, 0.0)
        h = jnp.maximum(h @ w2.T + b2, 0.0)
        return jax.nn.softmax(h @ w3.T, axis=1)

    # Small batch in native PyTorch layout.
    x_small = jax.random.normal(xkey, (8, 2), jnp.float32)
    out_small = jax.block_until_ready(net_forward(x_small, w1, w2, b2, w3))
    assert out_small.shape == (8, 4)
    assert jnp.allclose(jnp.sum(out_small, axis=1), 1.0, atol=1e-5)
    # bf16 MXU inputs (f32 accumulate) -> modest absolute tolerance vs. f32 reference.
    assert jnp.allclose(out_small, reference(x_small), atol=2e-2)

    # Larger batch exercising the multi-chunk inner loop and a multi-step grid.
    x_big = jax.random.normal(xkey2, (2048, 2), jnp.float32)
    out_big = jax.block_until_ready(
        net_forward(x_big, w1, w2, b2, w3, block_rows=1024))
    assert out_big.shape == (2048, 4)
    assert jnp.allclose(jnp.sum(out_big, axis=1), 1.0, atol=1e-5)
    assert jnp.allclose(out_big, reference(x_big), atol=2e-2)

    print("KERNEL_OK")
</pallas_src>

<mosaic_0001>
module attributes {stable_mosaic.version = 11 : i64} {
  func.func @_mlp_softmax_kernel(%arg0: i32, %arg1: memref<256x2xf32, #tpu.memory_space<vmem>>, %arg2: memref<2x10xf32, #tpu.memory_space<vmem>>, %arg3: memref<10x50xbf16, #tpu.memory_space<vmem>>, %arg4: memref<1x50xf32, #tpu.memory_space<vmem>>, %arg5: memref<50x4xbf16, #tpu.memory_space<vmem>>, %arg6: memref<256x4xf32, #tpu.memory_space<vmem>>) attributes {dimension_semantics = [#tpu.dimension_semantics<parallel>], iteration_bounds = array<i64: 1>, scalar_prefetch = 0 : i64, scratch_operands = 0 : i64, tpu.core_type = #tpu.core_type<tc>, window_params = [{transform_indices = @transform_0, window_bounds = array<i64: 256, 2>}, {pipeline_mode = #tpu.pipeline_mode<synchronous>, transform_indices = @transform_1, window_bounds = array<i64: 2, 10>}, {pipeline_mode = #tpu.pipeline_mode<synchronous>, transform_indices = @transform_2, window_bounds = array<i64: 10, 50>}, {pipeline_mode = #tpu.pipeline_mode<synchronous>, transform_indices = @transform_3, window_bounds = array<i64: 1, 50>}, {pipeline_mode = #tpu.pipeline_mode<synchronous>, transform_indices = @transform_4, window_bounds = array<i64: 50, 4>}, {transform_indices = @transform_5, window_bounds = array<i64: 256, 4>}]} {
    %c0 = arith.constant 0 : index
    %c0_0 = arith.constant 0 : index
    %0 = vector.load %arg2[%c0, %c0_0] : memref<2x10xf32, #tpu.memory_space<vmem>>, vector<1x10xf32>
    %c1 = arith.constant 1 : index
    %c0_1 = arith.constant 0 : index
    %1 = vector.load %arg2[%c1, %c0_1] : memref<2x10xf32, #tpu.memory_space<vmem>>, vector<1x10xf32>
    %c0_2 = arith.constant 0 : index
    %c0_3 = arith.constant 0 : index
    %2 = vector.load %arg3[%c0_2, %c0_3] : memref<10x50xbf16, #tpu.memory_space<vmem>>, vector<10x50xbf16>
    %c0_4 = arith.constant 0 : index
    %c0_5 = arith.constant 0 : index
    %3 = vector.load %arg4[%c0_4, %c0_5] : memref<1x50xf32, #tpu.memory_space<vmem>>, vector<1x50xf32>
    %c0_6 = arith.constant 0 : index
    %c0_7 = arith.constant 0 : index
    %4 = vector.load %arg5[%c0_6, %c0_7] : memref<50x4xbf16, #tpu.memory_space<vmem>>, vector<50x4xbf16>
    %c0_i32 = arith.constant 0 : i32
    %c1_i32 = arith.constant 1 : i32
    %5 = arith.muli %c0_i32, %c1_i32 : i32
    %c0_i32_8 = arith.constant 0 : i32
    %6 = arith.addi %c0_i32_8, %5 : i32
    %c256_i32 = arith.constant 256 : i32
    %7 = arith.muli %6, %c256_i32 : i32
    %8 = tpu.assume_multiple %7, 256 : i32
    %9 = arith.index_cast %8 : i32 to index
    %c0_9 = arith.constant 0 : index
    %10 = vector.load %arg1[%9, %c0_9] : memref<256x2xf32, #tpu.memory_space<vmem>>, vector<256x2xf32>
    %11 = vector.extract_strided_slice %10 {offsets = [0, 0], sizes = [256, 1], strides = [1, 1]} : vector<256x2xf32> to vector<256x1xf32>
    %12 = vector.broadcast %11 : vector<256x1xf32> to vector<256x10xf32>
    %13 = vector.broadcast %0 : vector<1x10xf32> to vector<256x10xf32>
    %14 = arith.mulf %12, %13 : vector<256x10xf32>
    %15 = vector.extract_strided_slice %10 {offsets = [0, 1], sizes = [256, 1], strides = [1, 1]} : vector<256x2xf32> to vector<256x1xf32>
    %16 = vector.broadcast %15 : vector<256x1xf32> to vector<256x10xf32>
    %17 = vector.broadcast %1 : vector<1x10xf32> to vector<256x10xf32>
    %18 = arith.mulf %16, %17 : vector<256x10xf32>
    %19 = arith.addf %14, %18 : vector<256x10xf32>
    %cst = arith.constant 0.000000e+00 : f32
    %20 = vector.broadcast %cst : f32 to vector<256x10xf32>
    %21 = arith.maximumf %19, %20 : vector<256x10xf32>
    %22 = arith.truncf %21 : vector<256x10xf32> to vector<256x10xbf16>
    %cst_10 = arith.constant dense<0.000000e+00> : vector<256x50xf32>
    %23 = tpu.matmul %22, %2, %cst_10 {dimension_numbers = #tpu.dot_dimension_numbers<[1], [0], [0], [1], [0, 0, 1, 1], [], []>} : vector<256x10xbf16>, vector<10x50xbf16>, vector<256x50xf32> -> vector<256x50xf32>
    %24 = vector.broadcast %3 : vector<1x50xf32> to vector<256x50xf32>
    %25 = arith.addf %23, %24 : vector<256x50xf32>
    %cst_11 = arith.constant 0.000000e+00 : f32
    %26 = vector.broadcast %cst_11 : f32 to vector<256x50xf32>
    %27 = arith.maximumf %25, %26 : vector<256x50xf32>
    %28 = arith.truncf %27 : vector<256x50xf32> to vector<256x50xbf16>
    %cst_12 = arith.constant dense<0.000000e+00> : vector<256x4xf32>
    %29 = tpu.matmul %28, %4, %cst_12 {dimension_numbers = #tpu.dot_dimension_numbers<[1], [0], [0], [1], [0, 0, 1, 1], [], []>} : vector<256x50xbf16>, vector<50x4xbf16>, vector<256x4xf32> -> vector<256x4xf32>
    %cst_13 = arith.constant dense<0xFF800000> : vector<256xf32>
    %30 = vector.multi_reduction <maximumf>, %29, %cst_13 [1] : vector<256x4xf32> to vector<256xf32>
    %31 = vector.shape_cast %30 : vector<256xf32> to vector<256x1xf32>
    %32 = vector.broadcast %31 : vector<256x1xf32> to vector<256x4xf32>
    %33 = arith.subf %29, %32 : vector<256x4xf32>
    %34 = math.exp %33 : vector<256x4xf32>
    %cst_14 = arith.constant dense<0.000000e+00> : vector<256xf32>
    %35 = vector.multi_reduction <add>, %34, %cst_14 [1] : vector<256x4xf32> to vector<256xf32>
    %36 = vector.shape_cast %35 : vector<256xf32> to vector<256x1xf32>
    %37 = vector.broadcast %36 : vector<256x1xf32> to vector<256x4xf32>
    %38 = arith.divf %34, %37 : vector<256x4xf32>
    %39 = arith.index_cast %8 : i32 to index
    %c0_15 = arith.constant 0 : index
    %40 = vector.load %arg6[%39, %c0_15] : memref<256x4xf32, #tpu.memory_space<vmem>>, vector<256x4xf32>
    tpu.vector_store %arg6[%39, %c0_15], %38 {strides = array<i32>} : memref<256x4xf32, #tpu.memory_space<vmem>>, vector<256x4xf32>,
    %c1_i32_16 = arith.constant 1 : i32
    return
  }
  func.func @transform_0(%arg0: i32) -> (i32, i32) {
    %c0_i32 = arith.constant 0 : i32
    %c0_i32_0 = arith.constant 0 : i32
    return %arg0, %c0_i32 : i32, i32
  }
  func.func @transform_1(%arg0: i32) -> (i32, i32) {
    %c0_i32 = arith.constant 0 : i32
    %c0_i32_0 = arith.constant 0 : i32
    %c0_i32_1 = arith.constant 0 : i32
    return %c0_i32, %c0_i32_0 : i32, i32
  }
  func.func @transform_2(%arg0: i32) -> (i32, i32) {
    %c0_i32 = arith.constant 0 : i32
    %c0_i32_0 = arith.constant 0 : i32
    %c0_i32_1 = arith.constant 0 : i32
    return %c0_i32, %c0_i32_0 : i32, i32
  }
  func.func @transform_3(%arg0: i32) -> (i32, i32) {
    %c0_i32 = arith.constant 0 : i32
    %c0_i32_0 = arith.constant 0 : i32
    %c0_i32_1 = arith.constant 0 : i32
    return %c0_i32, %c0_i32_0 : i32, i32
  }
  func.func @transform_4(%arg0: i32) -> (i32, i32) {
    %c0_i32 = arith.constant 0 : i32
    %c0_i32_0 = arith.constant 0 : i32
    %c0_i32_1 = arith.constant 0 : i32
    return %c0_i32, %c0_i32_0 : i32, i32
  }
  func.func @transform_5(%arg0: i32) -> (i32, i32) {
    %c0_i32 = arith.constant 0 : i32
    %c0_i32_0 = arith.constant 0 : i32
    return %arg0, %c0_i32 : i32, i32
  }
}

</mosaic_0001>

<bundles_post_ra>
// kernel: net_forward.1
= control target key start
LH: loop header
LB: loop body
LE: loop exit
PB: predicated region body
PF: predicated region fallthrough
CT: control target
= control target key end

     0   :  { %v1893_v0 = vmov 1   ;;  %v1894_v1 = vmov 0   ;;  %vm556_vm0 = vcmask 1044480   ;;  %vm507_vm1 = vcmask 80896   ;;  %s2681_s0 = inlined_call_operand.vmem [shape: f32[256,2], index: 0, kind: input, shape index: {}]   ;;  %s2682_s1 = inlined_call_operand.vmem [shape: f32[2,10], index: 1, kind: input, shape index: {}]   ;;  %s2683_s2 = inlined_call_operand.vmem [shape: bf16[10,50], index: 2, kind: input, shape index: {}]   ;;  %s2684_s3 = inlined_call_operand.vmem [shape: f32[1,50], index: 3, kind: input, shape index: {}]   ;;  %s2685_s4 = inlined_call_operand.vmem [shape: bf16[50,4], index: 4, kind: input, shape index: {}]   ;;  %s2686_s5 = inlined_call_operand.vmem [shape: f32[256,4], index: 5, kind: output, shape index: {}]  }
   0x1   :  { %1725 = vset.pattern.permute.xlu1 %v1893_v0  ;;  %1724 = vset.pattern.permute.xlu0 %v1894_v1  ;;  %v33_v2 = vld [vmem:[%s2681_s0] sm:$0xff]  ;;  %v35_v3 = vld [vmem:[%s2681_s0 + $0x10] sm:$0xff]  ;;  %v34_v4 = vld [vmem:[%s2681_s0 + $0x8] sm:$0xff]  ;;  %vm767_vm2 = vcmask 1040384   ;;  %vm718_vm3 = vcmask 408576   ;;  %vm860_vm4 = vcmask 31744  }
   0x2   :  { %259 = vperm.xlu1 %1725, %v33_v2   ;;  %67 = vperm.xlu0 %1724, %v33_v2   ;;  %v36_v5 = vld [vmem:[%s2681_s0 + $0x18] sm:$0xff]  ;;  %v37_v6 = vld [vmem:[%s2681_s0 + $0x20] sm:$0xff]  ;;  %v38_v7 = vld [vmem:[%s2681_s0 + $0x28] sm:$0xff] }
   0x3   :  { %1726 = vset.pattern.permute.xlu2 %v1894_v1  ;;  %v39_v8 = vld [vmem:[%s2681_s0 + $0x30] sm:$0xff]  ;;  %v40_v9 = vld [vmem:[%s2681_s0 + $0x38] sm:$0xff]  ;;  %v42_v10 = vld [vmem:[%s2681_s0 + $0x48] sm:$0xff] }
   0x4   :  { %77 = vperm.xlu2 %1726, %v35_v3   ;;  %v41_v11 = vld [vmem:[%s2681_s0 + $0x40] sm:$0xff]  ;;  %v43_v12 = vld [vmem:[%s2681_s0 + $0x50] sm:$0xff]  ;;  %v46_v13 = vld [vmem:[%s2681_s0 + $0x68] sm:$0xff] }
   0x5   :  { %v44_v14 = vld [vmem:[%s2681_s0 + $0x58] sm:$0xff]  ;;  %v47_v15 = vld [vmem:[%s2681_s0 + $0x70] sm:$0xff]  ;;  %v45_v16 = vld [vmem:[%s2681_s0 + $0x60] sm:$0xff] }
   0x6   :  { %v50_v17 = vld [vmem:[%s2681_s0 + $0x88] sm:$0xff]  ;;  %v48_v18 = vld [vmem:[%s2681_s0 + $0x78] sm:$0xff]  ;;  %v51_v19 = vld [vmem:[%s2681_s0 + $0x90] sm:$0xff] }
   0x7   :  { %v1667_v20 = vld [vmem:[%s2683_s2] sm:$0xf]  ;;  %v1713_v21 = vld [vmem:[%s2683_s2] sm:$0x10]  ;;  %v54_v26 = vld [vmem:[%s2681_s0 + $0xa8] sm:$0xff] }
   0x8   :  { %v1668_v22 = vor.u32 %v1713_v21, %v1667_v20  ;;  %v49_v23 = vld [vmem:[%s2681_s0 + $0x80] sm:$0xff]  ;;  %v55_v27 = vld [vmem:[%s2681_s0 + $0xb0] sm:$0xff]  ;;  %v52_v29 = vld [vmem:[%s2681_s0 + $0x98] sm:$0xff] }
   0x9   :  { %v2024_v32 = vld [vmem:[%s2682_s1] ss:$0 sm:$0xff]  ;;  %v2029_v33 = vld [vmem:[%s2682_s1 + $0x1] ss:$0 sm:$0xff]  ;;  %v58_v55 = vld [vmem:[%s2681_s0 + $0xc8] sm:$0xff] }
   0xa   :  { %263 = vperm.xlu1 %1725, %v34_v4   ;;  %72 = vperm.xlu0 %1724, %v34_v4   ;;  %v558_v24 = vsel %vm556_vm0, %v1668_v22, 0  ;;  %v53_v37 = vld [vmem:[%s2681_s0 + $0xa0] sm:$0xff]  ;;  %v56_v59 = vld [vmem:[%s2681_s0 + $0xb8] sm:$0xff]  ;;  %v59_v63 = vld [vmem:[%s2681_s0 + $0xd0] sm:$0xff] }
   0xb   :  { %567 = vmatpush.bf16.msra.mxu0 %v558_v24  ;;  %1717 = vmatpush.bf16.msra.mxu3 %v558_v24 }
   0xc   :  { %82 = vperm.xlu2 %1726, %v36_v5  }
  0x12   :  { %271 = vperm.xlu1 %1725, %v36_v5   ;;  %1727 = vset.pattern.permute.xlu0 %v1893_v0  ;;  %v57_v5 = vld [vmem:[%s2681_s0 + $0xc0] sm:$0xff] }
  0x13   :  { %267 = vperm.xlu0 %1727, %v35_v3  }
  0x14   :  { %87 = vperm.xlu2 %1726, %v37_v6  }
  0x1a   :  { %1728 = vset.pattern.permute.xlu1 %v1894_v1 }
  0x1b   :  { %92 = vperm.xlu1 %1728, %v38_v7   ;;  %279 = vperm.xlu0 %1727, %v38_v7  }
  0x1c   :  { %1729 = vset.pattern.permute.xlu2 %v1893_v0 }
  0x1d   :  { %275 = vperm.xlu2 %1729, %v37_v6  }
  0x23   :  { %97 = vperm.xlu1 %1728, %v39_v8   ;;  %283 = vperm.xlu0 %1727, %v39_v8  }
  0x25   :  { %1730 = vset.pattern.permute.xlu2 %v1894_v1 }
  0x26   :  { %102 = vperm.xlu2 %1730, %v40_v9  }
  0x2b   :  { %1731 = vset.pattern.permute.xlu1 %v1893_v0  ;;  %1732 = vset.pattern.permute.xlu0 %v1894_v1 }
  0x2c   :  { %287 = vperm.xlu1 %1731, %v40_v9   ;;  %112 = vperm.xlu0 %1732, %v42_v10  }
  0x2e   :  { %107 = vperm.xlu2 %1730, %v41_v11  }
  0x34   :  { %291 = vperm.xlu1 %1731, %v41_v11   ;;  %1736 = vset.pattern.permute.xlu0 %v1893_v0 }
  0x35   :  { %299 = vperm.xlu0 %1736, %v43_v12  }
  0x36   :  { %1733 = vset.pattern.permute.xlu2 %v1893_v0 }
  0x37   :  { %295 = vperm.xlu2 %1733, %v42_v10  }
  0x3c   :  { %1734 = vset.pattern.permute.xlu1 %v1894_v1 }
  0x3d   :  { %117 = vperm.xlu1 %1734, %v43_v12   ;;  %311 = vperm.xlu0 %1736, %v46_v13  }
  0x3f   :  { %1735 = vset.pattern.permute.xlu2 %v1894_v1 }
  0x40   :  { %122 = vperm.xlu2 %1735, %v44_v14  }
  0x45   :  { %1737 = vset.pattern.permute.xlu1 %v1893_v0  ;;  %315 = vperm.xlu0 %1736, %v47_v15  }
  0x46   :  { %303 = vperm.xlu1 %1737, %v44_v14  }
  0x48   :  { %127 = vperm.xlu2 %1735, %v45_v16  }
  0x4d   :  { %1742 = vset.pattern.permute.xlu0 %v1894_v1 }
  0x4e   :  { %1738 = vset.pattern.permute.xlu1 %v1894_v1  ;;  %152 = vperm.xlu0 %1742, %v50_v17  }
  0x4f   :  { %132 = vperm.xlu1 %1738, %v46_v13  }
  0x50   :  { %1739 = vset.pattern.permute.xlu2 %v1893_v0 }
  0x51   :  { %307 = vperm.xlu2 %1739, %v45_v16   ;;  %v62_v16 = vld [vmem:[%s2681_s0 + $0xe8] sm:$0xff] }
  0x56   :  { %1746 = vset.pattern.permute.xlu0 %v1893_v0 }
  0x57   :  { %137 = vperm.xlu1 %1738, %v47_v15   ;;  %331 = vperm.xlu0 %1746, %v51_v19  }
  0x59   :  { %1740 = vset.pattern.permute.xlu2 %v1894_v1 }
  0x5a   :  { %142 = vperm.xlu2 %1740, %v48_v18  }
  0x5e   :  { %v78_v25 = vpop.permute.xlu2 %77 }
  0x5f   :  { %1741 = vset.pattern.permute.xlu1 %v1893_v0  ;;  %343 = vperm.xlu0 %1746, %v54_v26   ;;  %v228_v54 = vmul.f32 %v2024_v32, %v78_v25 }
  0x60   :  { %319 = vperm.xlu1 %1741, %v48_v18  }
  0x62   :  { %147 = vperm.xlu2 %1740, %v49_v23  }
  0x66   :  { %v83_v28 = vpop.permute.xlu2 %82 }
  0x67   :  { %347 = vperm.xlu0 %1746, %v55_v27   ;;  %v229_v50 = vmul.f32 %v2024_v32, %v83_v28 }
  0x68   :  { %323 = vperm.xlu1 %1741, %v49_v23   ;;  %v60_v23 = vld [vmem:[%s2681_s0 + $0xd8] sm:$0xff] }
  0x6a   :  { %1743 = vset.pattern.permute.xlu2 %v1893_v0 }
  0x6b   :  { %327 = vperm.xlu2 %1743, %v50_v17  }
  0x6e   :  { %v88_v34 = vpop.permute.xlu2 %87 }
  0x6f   :  { %1752 = vset.pattern.permute.xlu0 %v1894_v1  ;;  %v230_v8 = vmul.f32 %v2024_v32, %v88_v34 }
  0x70   :  { %1744 = vset.pattern.permute.xlu1 %v1894_v1  ;;  %192 = vperm.xlu0 %1752, %v58_v55  }
  0x71   :  { %157 = vperm.xlu1 %1744, %v51_v19  }
  0x73   :  { %1745 = vset.pattern.permute.xlu2 %v1894_v1 }
  0x74   :  { %v260_v30 = vpop.permute.xlu1 %259  ;;  %v68_v31 = vpop.permute.xlu0 %67  ;;  %162 = vperm.xlu2 %1745, %v52_v29  }
  0x75   :  { %v387_v35 = vmul.f32 %v2029_v33, %v260_v30  ;;  %v226_v36 = vmul.f32 %v2024_v32, %v68_v31 }
  0x77   :  { %v419_v40 = vadd.f32 %v387_v35, %v226_v36  ;;  %v276_v44 = vpop.permute.xlu2 %275 }
  0x78   :  { %1756 = vset.pattern.permute.xlu0 %v1893_v0  ;;  %v391_v9 = vmul.f32 %v2029_v33, %v276_v44 }
  0x79   :  { %1747 = vset.pattern.permute.xlu1 %v1893_v0  ;;  %v451_v45 = vmax.f32 %v419_v40, 0.0  ;;  %363 = vperm.xlu0 %1756, %v59_v63  }
  0x7a   :  { %335 = vperm.xlu1 %1747, %v52_v29   ;;  %v423_v12 = vadd.f32 %v391_v9, %v230_v8 }
  0x7c   :  { %v264_v38 = vpop.permute.xlu1 %263  ;;  %v73_v39 = vpop.permute.xlu0 %72  ;;  %167 = vperm.xlu2 %1745, %v53_v37   ;;  %v455_v15 = vmax.f32 %v423_v12, 0.0  ;;  %v32_v12 = vld [vmem:[%s2685_s4 + $0x18] sm:$0x1] }
  0x7d   :  { %v388_v41 = vmul.f32 %v2029_v33, %v264_v38  ;;  %v227_v42 = vmul.f32 %v2024_v32, %v73_v39 }
  0x7f   :  { %v420_v43 = vadd.f32 %v388_v41, %v227_v42  ;;  %v61_v41 = vld [vmem:[%s2681_s0 + $0xe0] sm:$0xff] }
  0x80   :  { %v103_v53 = vpop.permute.xlu2 %102 }
  0x81   :  { %v452_v46 = vmax.f32 %v420_v43, 0.0  ;;  %375 = vperm.xlu0 %1756, %v62_v16   ;;  %v233_v21 = vmul.f32 %v2024_v32, %v103_v53 }
  0x82   :  { %1748 = vset.pattern.permute.xlu1 %v1894_v1 }
  0x83   :  { %172 = vperm.xlu1 %1748, %v54_v26   ;;  %v483_v47 = vpack.c.bf16 %v452_v46, %v451_v45  ;;  %v63_v26 = vld [vmem:[%s2681_s0 + $0xf0] sm:$0xff] }
  0x84   :  { %v272_v48 = vpop.permute.xlu1 %271  ;;  %1749 = vset.pattern.permute.xlu2 %v1893_v0 }
  0x85   :  { %1669 = vmatmul.msk.bf16.vlgmr.msra.gmra.mxu0 %vm507_vm1, %v483_v47  ;;  %v268_v49 = vpop.permute.xlu0 %267  ;;  %339 = vperm.xlu2 %1749, %v53_v37   ;;  %v390_v51 = vmul.f32 %v2029_v33, %v272_v48 }
  0x86   :  { %v389_v52 = vmul.f32 %v2029_v33, %v268_v49 }
  0x87   :  { %v422_v56 = vadd.f32 %v390_v51, %v229_v50 }
  0x88   :  { %v421_v57 = vadd.f32 %v389_v52, %v228_v54  ;;  %v108_v62 = vpop.permute.xlu2 %107  ;;  %v64_v52 = vld [vmem:[%s2681_s0 + $0xf8] sm:$0xff] }
  0x89   :  { %v454_v60 = vmax.f32 %v422_v56, 0.0  ;;  %379 = vperm.xlu0 %1756, %v63_v26   ;;  %v234_v37 = vmul.f32 %v2024_v32, %v108_v62 }
  0x8a   :  { %v453_v61 = vmax.f32 %v421_v57, 0.0 }
  0x8b   :  { %177 = vperm.xlu1 %1748, %v55_v27  }
  0x8c   :  { %v484_v2 = vpack.c.bf16 %v454_v60, %v453_v61 }
  0x8d   :  { %v93_v58 = vpop.permute.xlu1 %92  ;;  %1750 = vset.pattern.permute.xlu2 %v1894_v1  ;;  %v280_v3 = vpop.permute.xlu0 %279 }
  0x8e   :  { %182 = vperm.xlu2 %1750, %v56_v59   ;;  %v231_v6 = vmul.f32 %v2024_v32, %v93_v58  ;;  %v392_v7 = vmul.f32 %v2029_v33, %v280_v3 }
  0x90   :  { %v424_v10 = vadd.f32 %v392_v7, %v231_v6 }
  0x91   :  { %v296_v11 = vpop.permute.xlu2 %295 }
  0x92   :  { %v456_v14 = vmax.f32 %v424_v10, 0.0  ;;  %v396_v39 = vmul.f32 %v2029_v33, %v296_v11 }
  0x93   :  { %1751 = vset.pattern.permute.xlu1 %v1893_v0 }
  0x94   :  { %351 = vperm.xlu1 %1751, %v56_v59   ;;  %v485_v17 = vpack.c.bf16 %v456_v14, %v455_v15 }
  0x95   :  { %v98_v4 = vpop.permute.xlu1 %97  ;;  %1670 = vmatmul.msk.bf16.gmra.mxu0 %vm507_vm1, %v484_v2  ;;  %v284_v19 = vpop.permute.xlu0 %283 }
  0x96   :  { %187 = vperm.xlu2 %1750, %v57_v5   ;;  %v232_v24 = vmul.f32 %v2024_v32, %v98_v4  ;;  %v393_v25 = vmul.f32 %v2029_v33, %v284_v19 }
  0x98   :  { %v425_v28 = vadd.f32 %v393_v25, %v232_v24 }
  0x9a   :  { %v123_v18 = vpop.permute.xlu2 %122  ;;  %v457_v34 = vmax.f32 %v425_v28, 0.0  ;;  %v1715_v28 = vld [vmem:[%s2685_s4 + $0x8] sm:$0xff] }
  0x9b   :  { %v237_v54 = vmul.f32 %v2024_v32, %v123_v18 }
  0x9c   :  { %355 = vperm.xlu1 %1751, %v57_v5  }
  0x9e   :  { %v288_v13 = vpop.permute.xlu1 %287  ;;  %1753 = vset.pattern.permute.xlu2 %v1893_v0  ;;  %v113_v36 = vpop.permute.xlu0 %112 }
  0x9f   :  { %359 = vperm.xlu2 %1753, %v58_v55   ;;  %v394_v22 = vmul.f32 %v2029_v33, %v288_v13  ;;  %v235_v40 = vmul.f32 %v2024_v32, %v113_v36  ;;  %v710_v13 = vunpack.c.l.b16 %v32_v12 }
  0xa1   :  { %v426_v27 = vadd.f32 %v394_v22, %v233_v21  ;;  %v428_v45 = vadd.f32 %v396_v39, %v235_v40  ;;  %v1716_v22 = vld [vmem:[%s2685_s4 + $0x10] sm:$0xff] }
  0xa2   :  { %v128_v29 = vpop.permute.xlu2 %127 }
  0xa3   :  { %v458_v30 = vmax.f32 %v426_v27, 0.0  ;;  %v460_v48 = vmax.f32 %v428_v45, 0.0 }
  0xa4   :  { %1754 = vset.pattern.permute.xlu1 %v1894_v1 }
  0xa5   :  { %1671 = vmatmul.msk.bf16.gmra.mxu0 %vm507_vm1, %v485_v17  ;;  %197 = vperm.xlu1 %1754, %v59_v63   ;;  %v486_v35 = vpack.c.bf16 %v458_v30, %v457_v34  ;;  %v714_v17 = vpack.c.b16 %v710_v13, %v710_v13 }
  0xa6   :  { %v292_v20 = vpop.permute.xlu1 %291 }
  0xa7   :  { %1755 = vset.pattern.permute.xlu2 %v1894_v1  ;;  %v395_v38 = vmul.f32 %v2029_v33, %v292_v20  ;;  %v300_v46 = vpop.permute.xlu0 %299  ;;  %v769_v18 = vsel %vm767_vm2, %v714_v17, 0 }
  0xa8   :  { %202 = vperm.xlu2 %1755, %v60_v23   ;;  %v397_v56 = vmul.f32 %v2029_v33, %v300_v46  ;;  %775 = vmatpush.bf16.msra.mxu1 %v769_v18 }
  0xa9   :  { %v427_v44 = vadd.f32 %v395_v38, %v234_v37  ;;  %1718 = vmatpush.bf16.msra.mxu2 %v769_v18  ;;  %v1714_v37 = vld [vmem:[%s2685_s4] sm:$0xff] }
  0xab   :  { %v308_v43 = vpop.permute.xlu2 %307  ;;  %v459_v47 = vmax.f32 %v427_v44, 0.0 }
  0xac   :  { %v399_v7 = vmul.f32 %v2029_v33, %v308_v43  ;;  %776 = vmatpush.bf16.msra.mxu1 %v1716_v22 }
  0xad   :  { %1757 = vset.pattern.permute.xlu1 %v1893_v0  ;;  %v487_v51 = vpack.c.bf16 %v460_v48, %v459_v47  ;;  %1719 = vmatpush.bf16.msra.mxu2 %v1716_v22 }
  0xae   :  { %367 = vperm.xlu1 %1757, %v60_v23  }
  0xaf   :  { %v118_v31 = vpop.permute.xlu1 %117  ;;  %v312_v57 = vpop.permute.xlu0 %311 }
  0xb0   :  { %207 = vperm.xlu2 %1755, %v61_v41   ;;  %v236_v53 = vmul.f32 %v2024_v32, %v118_v31  ;;  %777 = vmatpush.bf16.msra.mxu1 %v1715_v28 }
  0xb1   :  { %1720 = vmatpush.bf16.msra.mxu2 %v1715_v28 }
  0xb2   :  { %v429_v61 = vadd.f32 %v397_v56, %v236_v53 }
  0xb4   :  { %v143_v50 = vpop.permute.xlu2 %142  ;;  %v461_v63 = vmax.f32 %v429_v61, 0.0  ;;  %778 = vmatpush.bf16.msra.mxu1 %v1714_v37 }
  0xb5   :  { %1672 = vmatmul.msk.bf16.gmra.mxu0 %vm507_vm1, %v486_v35  ;;  %v241_v23 = vmul.f32 %v2024_v32, %v143_v50  ;;  %1721 = vmatpush.bf16.msra.mxu2 %v1714_v37 }
  0xb6   :  { %1758 = vset.pattern.permute.xlu1 %v1894_v1 }
  0xb7   :  { %212 = vperm.xlu1 %1758, %v62_v16   ;;  %v316_v2 = vpop.permute.xlu0 %315 }
  0xb8   :  { %v304_v42 = vpop.permute.xlu1 %303  ;;  %1759 = vset.pattern.permute.xlu2 %v1893_v0  ;;  %v401_v30 = vmul.f32 %v2029_v33, %v316_v2 }
  0xb9   :  { %371 = vperm.xlu2 %1759, %v61_v41   ;;  %v398_v55 = vmul.f32 %v2029_v33, %v304_v42 }
  0xbb   :  { %v430_v60 = vadd.f32 %v398_v55, %v237_v54 }
  0xbc   :  { %v2104_v59 = vpop.permute.xlu2 %147 }
  0xbd   :  { %v462_v62 = vmax.f32 %v430_v60, 0.0  ;;  %v242_v54 = vmul.f32 %v2024_v32, %v2104_v59 }
  0xbf   :  { %217 = vperm.xlu1 %1758, %v63_v26   ;;  %v488_v4 = vpack.c.bf16 %v462_v62, %v461_v63 }
  0xc0   :  { %v153_v9 = vpop.permute.xlu0 %152 }
  0xc1   :  { %v133_v49 = vpop.permute.xlu1 %132  ;;  %1760 = vset.pattern.permute.xlu2 %v1894_v1  ;;  %v400_v1 = vmul.f32 %v2029_v33, %v312_v57  ;;  %v243_v57 = vmul.f32 %v2024_v32, %v153_v9 }
  0xc2   :  { %222 = vperm.xlu2 %1760, %v64_v52   ;;  %v239_v6 = vmul.f32 %v2024_v32, %v133_v49 }
  0xc4   :  { %v432_v10 = vadd.f32 %v400_v1, %v239_v6 }
  0xc5   :  { %1673 = vmatmul.msk.bf16.gmra.mxu0 %vm507_vm1, %v487_v51  ;;  %v2106_v5 = vpop.permute.xlu2 %327 }
  0xc6   :  { %v464_v15 = vmax.f32 %v432_v10, 0.0  ;;  %v404_v56 = vmul.f32 %v2029_v33, %v2106_v5  ;;  %v2149_v5 = vld [vmem:[%s2684_s3] ss:$0 sm:$0xff] }
  0xc7   :  { %1761 = vset.pattern.permute.xlu1 %v1893_v0  ;;  %v238_v0 = vmul.f32 %v2024_v32, %v128_v29 }
  0xc8   :  { %383 = vperm.xlu1 %1761, %v64_v52   ;;  %v436_v62 = vadd.f32 %v404_v56, %v243_v57 }
  0xc9   :  { %v138_v58 = vpop.permute.xlu1 %137  ;;  %v431_v11 = vadd.f32 %v399_v7, %v238_v0  ;;  %v332_v21 = vpop.permute.xlu0 %331 }
  0xca   :  { %v405_v26 = vmul.f32 %v2029_v33, %v332_v21  ;;  %v240_v29 = vmul.f32 %v2024_v32, %v138_v58  ;;  %v468_v0 = vmax.f32 %v436_v62, 0.0 }
  0xcb   :  { %v463_v16 = vmax.f32 %v431_v11, 0.0 }
  0xcc   :  { %v433_v38 = vadd.f32 %v401_v30, %v240_v29 }
  0xcd   :  { %v489_v20 = vpack.c.bf16 %v464_v15, %v463_v16 }
  0xce   :  { %v163_v14 = vpop.permute.xlu2 %162  ;;  %v465_v43 = vmax.f32 %v433_v38, 0.0 }
  0xcf   :  { %v245_v34 = vmul.f32 %v2024_v32, %v163_v14 }
  0xd1   :  { %v344_v46 = vpop.permute.xlu0 %343 }
  0xd2   :  { %v320_v3 = vpop.permute.xlu1 %319  ;;  %v408_v52 = vmul.f32 %v2029_v33, %v344_v46 }
  0xd3   :  { %v402_v24 = vmul.f32 %v2029_v33, %v320_v3 }
  0xd5   :  { %1674 = vmatmul.msk.bf16.gmra.mxu0 %vm507_vm1, %v488_v4  ;;  %v434_v31 = vadd.f32 %v402_v24, %v241_v23 }
  0xd6   :  { %v168_v27 = vpop.permute.xlu2 %167 }
  0xd7   :  { %v466_v40 = vmax.f32 %v434_v31, 0.0  ;;  %v246_v49 = vmul.f32 %v2024_v32, %v168_v27 }
  0xd9   :  { %v490_v47 = vpack.c.bf16 %v466_v40, %v465_v43  ;;  %v348_v10 = vpop.permute.xlu0 %347 }
  0xda   :  { %v324_v8 = vpop.permute.xlu1 %323  ;;  %v409_v13 = vmul.f32 %v2029_v33, %v348_v10 }
  0xdb   :  { %v403_v55 = vmul.f32 %v2029_v33, %v324_v8 }
  0xdd   :  { %v435_v61 = vadd.f32 %v403_v55, %v242_v54 }
  0xdf   :  { %v340_v45 = vpop.permute.xlu2 %339  ;;  %v467_v4 = vmax.f32 %v435_v61, 0.0 }
  0xe0   :  { %v407_v51 = vmul.f32 %v2029_v33, %v340_v45 }
  0xe1   :  { %v491_v59 = vpack.c.bf16 %v468_v0, %v467_v4 }
  0xe2   :  { %v439_v58 = vadd.f32 %v407_v51, %v246_v49  ;;  %v193_v28 = vpop.permute.xlu0 %192 }
  0xe3   :  { %v158_v19 = vpop.permute.xlu1 %157 }
  0xe4   :  { %v244_v25 = vmul.f32 %v2024_v32, %v158_v19  ;;  %v471_v63 = vmax.f32 %v439_v58, 0.0 }
  0xe5   :  { %1675 = vmatmul.msk.bf16.gmra.mxu0 %vm507_vm1, %v489_v20 }
  0xe6   :  { %v437_v35 = vadd.f32 %v405_v26, %v244_v25 }
  0xe8   :  { %v469_v42 = vmax.f32 %v437_v35, 0.0  ;;  %v183_v6 = vpop.permute.xlu2 %182  ;;  %v251_v35 = vmul.f32 %v2024_v32, %v193_v28 }
  0xe9   :  { %v249_v11 = vmul.f32 %v2024_v32, %v183_v6 }
  0xeb   :  { %v364_v49 = vpop.permute.xlu0 %363 }
  0xec   :  { %v336_v36 = vpop.permute.xlu1 %335  ;;  %v413_v55 = vmul.f32 %v2029_v33, %v364_v49 }
  0xed   :  { %v406_v39 = vmul.f32 %v2029_v33, %v336_v36 }
  0xef   :  { %v438_v41 = vadd.f32 %v406_v39, %v245_v34 }
  0xf0   :  { %v188_v14 = vpop.permute.xlu2 %187 }
  0xf1   :  { %v470_v44 = vmax.f32 %v438_v41, 0.0  ;;  %v250_v30 = vmul.f32 %v2024_v32, %v188_v14 }
  0xf3   :  { %v492_v48 = vpack.c.bf16 %v470_v44, %v469_v42  ;;  %v376_v10 = vpop.permute.xlu0 %375 }
  0xf5   :  { %1676 = vmatmul.msk.bf16.gmra.mxu0 %vm507_vm1, %v490_v47  ;;  %1678 = vmatmul.msk.bf16.vlgmr.msra.gmra.mxu3 %vm507_vm1, %v492_v48  ;;  %v173_v50 = vpop.permute.xlu1 %172 }
  0xf6   :  { %v247_v53 = vmul.f32 %v2024_v32, %v173_v50 }
  0xf8   :  { %v440_v60 = vadd.f32 %v408_v52, %v247_v53 }
  0xf9   :  { %v360_v26 = vpop.permute.xlu2 %359 }
  0xfa   :  { %v472_v2 = vmax.f32 %v440_v60, 0.0  ;;  %v412_v31 = vmul.f32 %v2029_v33, %v360_v26 }
  0xfb   :  { %v380_v28 = vpop.permute.xlu0 %379 }
  0xfc   :  { %v493_v1 = vpack.c.bf16 %v472_v2, %v471_v63  ;;  %v444_v39 = vadd.f32 %v412_v31, %v251_v35 }
  0xfd   :  { %v178_v3 = vpop.permute.xlu1 %177 }
  0xfe   :  { %v248_v9 = vmul.f32 %v2024_v32, %v178_v3  ;;  %v476_v45 = vmax.f32 %v444_v39, 0.0 }
 0x100   :  { %v441_v18 = vadd.f32 %v409_v13, %v248_v9 }
 0x102   :  { %v569_v7 = vpop.f32.mrf.mxu0  ;;  %v473_v24 = vmax.f32 %v441_v18, 0.0  ;;  %v203_v46 = vpop.permute.xlu2 %202 }
 0x103   :  { %v570_v15 = vadd.f32 %v2149_v5, %v569_v7  ;;  %v253_v53 = vmul.f32 %v2024_v32, %v203_v46 }
 0x105   :  { %1677 = vmatmul.msk.bf16.gmra.mxu0 %vm507_vm1, %v491_v59  ;;  %1679 = vmatmul.msk.bf16.gmra.mxu3 %vm507_vm1, %v493_v1  ;;  %v649_v20 = vmax.f32 %v570_v15, 0.0 }
 0x106   :  { %v352_v8 = vpop.permute.xlu1 %351 }
 0x107   :  { %v410_v12 = vmul.f32 %v2029_v33, %v352_v8 }
 0x109   :  { %v442_v17 = vadd.f32 %v410_v12, %v249_v11  ;;  %v416_v12 = vmul.f32 %v2029_v33, %v376_v10 }
 0x10a   :  { %v571_v16 = vpop.f32.mrf.mxu0  ;;  %v208_v56 = vpop.permute.xlu2 %207 }
 0x10b   :  { %v572_v19 = vadd.f32 %v2149_v5, %v571_v16  ;;  %v474_v23 = vmax.f32 %v442_v17, 0.0  ;;  %v254_v8 = vmul.f32 %v2024_v32, %v208_v56 }
 0x10d   :  { %v650_v21 = vmax.f32 %v572_v19, 0.0  ;;  %v494_v29 = vpack.c.bf16 %v474_v23, %v473_v24 }
 0x10e   :  { %v356_v22 = vpop.permute.xlu1 %355 }
 0x10f   :  { %v681_v25 = vpack.c.bf16 %v650_v21, %v649_v20  ;;  %v411_v34 = vmul.f32 %v2029_v33, %v356_v22 }
 0x111   :  { %1697 = vmatmul.msk.bf16.vlgmr.msra.gmra.mxu1 %vm718_vm3, %v681_v25  ;;  %v443_v38 = vadd.f32 %v411_v34, %v250_v30  ;;  %v417_v34 = vmul.f32 %v2029_v33, %v380_v28 }
 0x112   :  { %v574_v27 = vpop.f32.mrf.mxu0 }
 0x113   :  { %v575_v37 = vadd.f32 %v2149_v5, %v574_v27  ;;  %v475_v44 = vmax.f32 %v443_v38, 0.0  ;;  %v372_v7 = vpop.permute.xlu2 %371 }
 0x114   :  { %v415_v11 = vmul.f32 %v2029_v33, %v372_v7 }
 0x115   :  { %1680 = vmatmul.msk.bf16.gmra.mxu3 %vm507_vm1, %v494_v29  ;;  %v651_v42 = vmax.f32 %v575_v37, 0.0  ;;  %v495_v48 = vpack.c.bf16 %v476_v45, %v475_v44 }
 0x116   :  { %v447_v14 = vadd.f32 %v415_v11, %v254_v8 }
 0x117   :  { %v198_v36 = vpop.permute.xlu1 %197 }
 0x118   :  { %v252_v52 = vmul.f32 %v2024_v32, %v198_v36  ;;  %v479_v21 = vmax.f32 %v447_v14, 0.0 }
 0x11a   :  { %v576_v40 = vpop.f32.mrf.mxu0  ;;  %v445_v60 = vadd.f32 %v413_v55, %v252_v52 }
 0x11b   :  { %v577_v41 = vadd.f32 %v2149_v5, %v576_v40 }
 0x11c   :  { %v477_v4 = vmax.f32 %v445_v60, 0.0  ;;  %v223_v26 = vpop.permute.xlu2 %222 }
 0x11d   :  { %v652_v43 = vmax.f32 %v577_v41, 0.0  ;;  %v257_v30 = vmul.f32 %v2024_v32, %v223_v26 }
 0x11f   :  { %v682_v47 = vpack.c.bf16 %v652_v43, %v651_v42 }
 0x120   :  { %v368_v51 = vpop.permute.xlu1 %367 }
 0x121   :  { %1698 = vmatmul.msk.bf16.gmra.mxu1 %vm718_vm3, %v682_v47  ;;  %v414_v54 = vmul.f32 %v2029_v33, %v368_v51 }
 0x122   :  { %v579_v50 = vpop.f32.mrf.mxu0 }
 0x123   :  { %v580_v57 = vadd.f32 %v2149_v5, %v579_v50  ;;  %v446_v58 = vadd.f32 %v414_v54, %v253_v53 }
 0x125   :  { %1681 = vmatmul.msk.bf16.gmra.mxu3 %vm507_vm1, %v495_v48  ;;  %v653_v63 = vmax.f32 %v580_v57, 0.0  ;;  %v478_v3 = vmax.f32 %v446_v58, 0.0 }
 0x127   :  { %v496_v1 = vpack.c.bf16 %v478_v3, %v477_v4 }
 0x129   :  { %v213_v6 = vpop.permute.xlu1 %212 }
 0x12a   :  { %v581_v61 = vpop.f32.mrf.mxu0  ;;  %v255_v9 = vmul.f32 %v2024_v32, %v213_v6 }
 0x12b   :  { %v582_v62 = vadd.f32 %v2149_v5, %v581_v61 }
 0x12c   :  { %v448_v15 = vadd.f32 %v416_v12, %v255_v9 }
 0x12d   :  { %v654_v2 = vmax.f32 %v582_v62, 0.0 }
 0x12e   :  { %v480_v22 = vmax.f32 %v448_v15, 0.0 }
 0x12f   :  { %v683_v0 = vpack.c.bf16 %v654_v2, %v653_v63 }
 0x130   :  { %v497_v24 = vpack.c.bf16 %v480_v22, %v479_v21 }
 0x131   :  { %1699 = vmatmul.msk.bf16.gmra.mxu1 %vm718_vm3, %v683_v0  ;;  %v218_v17 = vpop.permute.xlu1 %217 }
 0x132   :  { %v584_v59 = vpop.f32.mrf.mxu0  ;;  %v256_v29 = vmul.f32 %v2024_v32, %v218_v17 }
 0x133   :  { %v585_v13 = vadd.f32 %v2149_v5, %v584_v59 }
 0x134   :  { %v449_v38 = vadd.f32 %v417_v34, %v256_v29 }
 0x135   :  { %1682 = vmatmul.msk.bf16.gmra.mxu3 %vm507_vm1, %v496_v1  ;;  %v655_v19 = vmax.f32 %v585_v13, 0.0 }
 0x136   :  { %v481_v43 = vmax.f32 %v449_v38, 0.0 }
 0x13a   :  { %v586_v16 = vpop.f32.mrf.mxu0  ;;  %v384_v27 = vpop.permute.xlu1 %383 }
 0x13b   :  { %v587_v18 = vadd.f32 %v2149_v5, %v586_v16  ;;  %v418_v31 = vmul.f32 %v2029_v33, %v384_v27 }
 0x13d   :  { %v656_v20 = vmax.f32 %v587_v18, 0.0  ;;  %v450_v37 = vadd.f32 %v418_v31, %v257_v30 }
 0x13f   :  { %v684_v23 = vpack.c.bf16 %v656_v20, %v655_v19  ;;  %v482_v42 = vmax.f32 %v450_v37, 0.0 }
 0x141   :  { %1700 = vmatmul.msk.bf16.gmra.mxu1 %vm718_vm3, %v684_v23  ;;  %v498_v32 = vpack.c.bf16 %v482_v42, %v481_v43 }
 0x142   :  { %v589_v25 = vpop.f32.mrf.mxu0 }
 0x143   :  { %v590_v35 = vadd.f32 %v2149_v5, %v589_v25 }
 0x145   :  { %1683 = vmatmul.msk.bf16.gmra.mxu3 %vm507_vm1, %v497_v24  ;;  %v657_v40 = vmax.f32 %v590_v35, 0.0 }
 0x14a   :  { %v591_v36 = vpop.f32.mrf.mxu0 }
 0x14b   :  { %v592_v39 = vadd.f32 %v2149_v5, %v591_v36 }
 0x14d   :  { %v658_v41 = vmax.f32 %v592_v39, 0.0 }
 0x14f   :  { %v685_v44 = vpack.c.bf16 %v658_v41, %v657_v40 }
 0x151   :  { %1701 = vmatmul.msk.bf16.gmra.mxu1 %vm718_vm3, %v685_v44 }
 0x152   :  { %v594_v45 = vpop.f32.mrf.mxu0 }
 0x153   :  { %v595_v33 = vadd.f32 %v2149_v5, %v594_v45 }
 0x155   :  { %1684 = vmatmul.msk.bf16.gmra.mxu3 %vm507_vm1, %v498_v32  ;;  %v659_v48 = vmax.f32 %v595_v33, 0.0 }
 0x15a   :  { %v596_v46 = vpop.f32.mrf.mxu0 }
 0x15b   :  { %v597_v47 = vadd.f32 %v2149_v5, %v596_v46 }
 0x15d   :  { %v660_v49 = vmax.f32 %v597_v47, 0.0 }
 0x15f   :  { %v686_v50 = vpack.c.bf16 %v660_v49, %v659_v48 }
 0x161   :  { %1702 = vmatmul.msk.bf16.gmra.mxu1 %vm718_vm3, %v686_v50 }
 0x162   :  { %v599_v51 = vpop.f32.mrf.mxu0 }
 0x163   :  { %v600_v52 = vadd.f32 %v2149_v5, %v599_v51 }
 0x165   :  { %v661_v55 = vmax.f32 %v600_v52, 0.0 }
 0x16a   :  { %v601_v53 = vpop.f32.mrf.mxu0 }
 0x16b   :  { %v602_v54 = vadd.f32 %v2149_v5, %v601_v53 }
 0x16d   :  { %v662_v56 = vmax.f32 %v602_v54, 0.0 }
 0x16f   :  { %v687_v57 = vpack.c.bf16 %v662_v56, %v661_v55 }
 0x171   :  { %1703 = vmatmul.msk.bf16.gmra.mxu1 %vm718_vm3, %v687_v57 }
 0x172   :  { %v604_v58 = vpop.f32.mrf.mxu0 }
 0x173   :  { %v605_v61 = vadd.f32 %v2149_v5, %v604_v58 }
 0x175   :  { %v663_v2 = vmax.f32 %v605_v61, 0.0 }
 0x178   :  { %v614_v60 = vpop.f32.mrf.mxu3 }
 0x179   :  { %v615_v16 = vadd.f32 %v2149_v5, %v614_v60 }
 0x17a   :  { %v606_v62 = vpop.f32.mrf.mxu0 }
 0x17b   :  { %v607_v63 = vadd.f32 %v2149_v5, %v606_v62  ;;  %v667_v20 = vmax.f32 %v615_v16, 0.0 }
 0x17d   :  { %v664_v3 = vmax.f32 %v607_v63, 0.0 }
 0x17f   :  { %v688_v4 = vpack.c.bf16 %v664_v3, %v663_v2 }
 0x180   :  { %v616_v0 = vpop.f32.mrf.mxu3 }
 0x181   :  { %1704 = vmatmul.msk.bf16.gmra.mxu1 %vm718_vm3, %v688_v4  ;;  %v617_v17 = vadd.f32 %v2149_v5, %v616_v0 }
 0x182   :  { %v609_v6 = vpop.f32.mrf.mxu0 }
 0x183   :  { %v610_v7 = vadd.f32 %v2149_v5, %v609_v6  ;;  %v668_v21 = vmax.f32 %v617_v17, 0.0 }
 0x185   :  { %v665_v8 = vmax.f32 %v610_v7, 0.0  ;;  %v690_v23 = vpack.c.bf16 %v668_v21, %v667_v20 }
 0x188   :  { %v619_v1 = vpop.f32.mrf.mxu3 }
 0x189   :  { %v620_v27 = vadd.f32 %v2149_v5, %v619_v1 }
 0x18a   :  { %v611_v59 = vpop.f32.mrf.mxu0 }
 0x18b   :  { %v612_v10 = vadd.f32 %v2149_v5, %v611_v59  ;;  %v669_v30 = vmax.f32 %v620_v27, 0.0 }
 0x18d   :  { %v666_v9 = vmax.f32 %v612_v10, 0.0 }
 0x18e   :  { %v2204_v11 = vpop.f32.mrf.mxu1 }
 0x18f   :  { %v689_v12 = vpack.c.bf16 %v666_v9, %v665_v8  ;;  %v861_v13 = vsel %vm860_vm4, %v2204_v11, -inf }
 0x190   :  { %862 = vmax.xlane.f32.xlu2 %v861_v13  ;;  %v621_v14 = vpop.f32.mrf.mxu3 }
 0x191   :  { %1705 = vmatmul.msk.bf16.vlgmr.msra.gmra.mxu2 %vm718_vm3, %v689_v12  ;;  %v622_v28 = vadd.f32 %v2149_v5, %v621_v14 }
 0x193   :  { %v670_v31 = vmax.f32 %v622_v28, 0.0 }
 0x195   :  { %v691_v36 = vpack.c.bf16 %v670_v31, %v669_v30 }
 0x196   :  { %v2209_v15 = vpop.f32.mrf.mxu1 }
 0x197   :  { %v864_v18 = vsel %vm860_vm4, %v2209_v15, -inf }
 0x198   :  { %865 = vmax.xlane.f32.xlu0 %v864_v18  ;;  %v624_v19 = vpop.f32.mrf.mxu3 }
 0x199   :  { %v625_v42 = vadd.f32 %v2149_v5, %v624_v19 }
 0x19b   :  { %v671_v44 = vmax.f32 %v625_v42, 0.0 }
 0x19e   :  { %v2215_v22 = vpop.f32.mrf.mxu1 }
 0x19f   :  { %v867_v24 = vsel %vm860_vm4, %v2215_v22, -inf }
 0x1a0   :  { %868 = vmax.xlane.f32.xlu1 %v867_v24  ;;  %v626_v25 = vpop.f32.mrf.mxu3 }
 0x1a1   :  { %1706 = vmatmul.msk.bf16.gmra.mxu2 %vm718_vm3, %v690_v23  ;;  %v627_v39 = vadd.f32 %v2149_v5, %v626_v25 }
 0x1a3   :  { %v672_v43 = vmax.f32 %v627_v39, 0.0 }
 0x1a5   :  { %v692_v32 = vpack.c.bf16 %v672_v43, %v671_v44 }
 0x1a6   :  { %v2220_v26 = vpop.f32.mrf.mxu1 }
 0x1a7   :  { %v870_v29 = vsel %vm860_vm4, %v2220_v26, -inf }
 0x1a8   :  { %871 = vmax.xlane.f32.xlu2 %v870_v29  ;;  %v629_v34 = vpop.f32.mrf.mxu3 }
 0x1a9   :  { %v630_v48 = vadd.f32 %v2149_v5, %v629_v34 }
 0x1ab   :  { %v673_v51 = vmax.f32 %v630_v48, 0.0 }
 0x1ae   :  { %v2226_v35 = vpop.f32.mrf.mxu1 }
 0x1af   :  { %v873_v37 = vsel %vm860_vm4, %v2226_v35, -inf }
 0x1b0   :  { %874 = vmax.xlane.f32.xlu2 %v873_v37  ;;  %v631_v41 = vpop.f32.mrf.mxu3 }
 0x1b1   :  { %1707 = vmatmul.msk.bf16.gmra.mxu2 %vm718_vm3, %v691_v36  ;;  %v632_v49 = vadd.f32 %v2149_v5, %v631_v41 }
 0x1b3   :  { %v674_v52 = vmax.f32 %v632_v49, 0.0 }
 0x1b5   :  { %v693_v55 = vpack.c.bf16 %v674_v52, %v673_v51 }
 0x1b6   :  { %v2231_v38 = vpop.f32.mrf.mxu1 }
 0x1b7   :  { %v876_v40 = vsel %vm860_vm4, %v2231_v38, -inf }
 0x1b8   :  { %877 = vmax.xlane.f32.xlu0 %v876_v40  ;;  %v634_v46 = vpop.f32.mrf.mxu3 }
 0x1b9   :  { %v635_v60 = vadd.f32 %v2149_v5, %v634_v46 }
 0x1bb   :  { %v675_v63 = vmax.f32 %v635_v60, 0.0 }
 0x1be   :  { %v2237_v45 = vpop.f32.mrf.mxu1 }
 0x1bf   :  { %v879_v33 = vsel %vm860_vm4, %v2237_v45, -inf }
 0x1c0   :  { %880 = vmax.xlane.f32.xlu1 %v879_v33  ;;  %v636_v53 = vpop.f32.mrf.mxu3 }
 0x1c1   :  { %1708 = vmatmul.msk.bf16.gmra.mxu2 %vm718_vm3, %v692_v32  ;;  %v637_v61 = vadd.f32 %v2149_v5, %v636_v53 }
 0x1c3   :  { %v676_v2 = vmax.f32 %v637_v61, 0.0 }
 0x1c5   :  { %v694_v4 = vpack.c.bf16 %v676_v2, %v675_v63 }
 0x1c6   :  { %v2242_v47 = vpop.f32.mrf.mxu1 }
 0x1c7   :  { %v882_v50 = vsel %vm860_vm4, %v2242_v47, -inf }
 0x1c8   :  { %883 = vmax.xlane.f32.xlu2 %v882_v50  ;;  %v639_v57 = vpop.f32.mrf.mxu3 }
 0x1c9   :  { %v640_v7 = vadd.f32 %v2149_v5, %v639_v57 }
 0x1cb   :  { %v677_v9 = vmax.f32 %v640_v7, 0.0 }
 0x1ce   :  { %v2248_v54 = vpop.f32.mrf.mxu1 }
 0x1cf   :  { %v885_v56 = vsel %vm860_vm4, %v2248_v54, -inf }
 0x1d0   :  { %886 = vmax.xlane.f32.xlu0 %v885_v56  ;;  %v641_v6 = vpop.f32.mrf.mxu3 }
 0x1d1   :  { %1709 = vmatmul.msk.bf16.gmra.mxu2 %vm718_vm3, %v693_v55  ;;  %v642_v59 = vadd.f32 %v2149_v5, %v641_v6 }
 0x1d3   :  { %v678_v12 = vmax.f32 %v642_v59, 0.0 }
 0x1d5   :  { %v695_v14 = vpack.c.bf16 %v678_v12, %v677_v9 }
 0x1d6   :  { %v2253_v58 = vpop.f32.mrf.mxu1 }
 0x1d7   :  { %v888_v62 = vsel %vm860_vm4, %v2253_v58, -inf }
 0x1d8   :  { %889 = vmax.xlane.f32.xlu1 %v888_v62  ;;  %v644_v8 = vpop.f32.mrf.mxu3 }
 0x1d9   :  { %v645_v21 = vadd.f32 %v2149_v5, %v644_v8 }
 0x1db   :  { %v679_v24 = vmax.f32 %v645_v21, 0.0 }
 0x1de   :  { %v2259_v3 = vpop.f32.mrf.mxu1 }
 0x1df   :  { %v891_v0 = vsel %vm860_vm4, %v2259_v3, -inf }
 0x1e0   :  { %892 = vmax.xlane.f32.xlu2 %v891_v0  ;;  %v646_v17 = vpop.f32.mrf.mxu3 }
 0x1e1   :  { %1710 = vmatmul.msk.bf16.gmra.mxu2 %vm718_vm3, %v694_v4  ;;  %v647_v19 = vadd.f32 %v2149_v5, %v646_v17 }
 0x1e3   :  { %v680_v23 = vmax.f32 %v647_v19, 0.0 }
 0x1e5   :  { %v696_v27 = vpack.c.bf16 %v680_v23, %v679_v24 }
 0x1e6   :  { %v2264_v1 = vpop.f32.mrf.mxu1 }
 0x1e7   :  { %v894_v10 = vsel %vm860_vm4, %v2264_v1, -inf }
 0x1e8   :  { %895 = vmax.xlane.f32.xlu0 %v894_v10 }
 0x1ee   :  { %v2270_v13 = vpop.f32.mrf.mxu1 }
 0x1ef   :  { %v897_v16 = vsel %vm860_vm4, %v2270_v13, -inf }
 0x1f0   :  { %898 = vmax.xlane.f32.xlu1 %v897_v16 }
 0x1f1   :  { %1711 = vmatmul.msk.bf16.gmra.mxu2 %vm718_vm3, %v695_v14 }
 0x1f6   :  { %v2275_v18 = vpop.f32.mrf.mxu1 }
 0x1f7   :  { %v900_v20 = vsel %vm860_vm4, %v2275_v18, -inf }
 0x1f8   :  { %901 = vmax.xlane.f32.xlu2 %v900_v20 }
 0x1fe   :  { %v2281_v25 = vpop.f32.mrf.mxu1 }
 0x1ff   :  { %v903_v28 = vsel %vm860_vm4, %v2281_v25, -inf }
 0x200   :  { %904 = vmax.xlane.f32.xlu0 %v903_v28 }
 0x201   :  { %1712 = vmatmul.msk.bf16.gmra.mxu2 %vm718_vm3, %v696_v27 }
 0x203   :  { %v863_v29 = vpop.xlane.xlu2 %862 }
 0x204   :  { %v957_v30 = vsub.f32 %v2204_v11, %v863_v29 }
 0x206   :  { %v989_v31 = vmul.f32 1.442695, %v957_v30  ;;  %v2287_v34 = vpop.f32.mrf.mxu1 }
 0x207   :  { %v906_v5 = vsel %vm860_vm4, %v2287_v34, -inf }
 0x208   :  { %1765 = vpow2.f32 %v989_v31  ;;  %907 = vmax.xlane.f32.xlu1 %v906_v5 }
 0x20b   :  { %v866_v36 = vpop.xlane.xlu0 %865 }
 0x20c   :  { %v958_v37 = vsub.f32 %v2209_v15, %v866_v36 }
 0x20e   :  { %v2292_v39 = vpop.eup %1765  ;;  %v991_v40 = vmul.f32 1.442695, %v958_v37 }
 0x20f   :  { %v1053_v41 = vsel %vm860_vm4, %v2292_v39, 0.0 }
 0x210   :  { %1767 = vpow2.f32 %v991_v40  ;;  %1054 = vadd.xlane.f32.xlu0 %v1053_v41 }
 0x213   :  { %v869_v11 = vpop.xlane.xlu1 %868 }
 0x214   :  { %v959_v42 = vsub.f32 %v2215_v22, %v869_v11  ;;  %v2297_v43 = vpop.f32.mrf.mxu2 }
 0x215   :  { %v909_v44 = vsel %vm860_vm4, %v2297_v43, -inf }
 0x216   :  { %v2301_v32 = vpop.eup %1767  ;;  %v993_v33 = vmul.f32 1.442695, %v959_v42  ;;  %910 = vmax.xlane.f32.xlu2 %v909_v44 }
 0x217   :  { %v1056_v15 = vsel %vm860_vm4, %v2301_v32, 0.0 }
 0x218   :  { %1769 = vpow2.f32 %v993_v33  ;;  %1057 = vadd.xlane.f32.xlu1 %v1056_v15 }
 0x21b   :  { %v872_v46 = vpop.xlane.xlu2 %871 }
 0x21c   :  { %v960_v48 = vsub.f32 %v2220_v26, %v872_v46  ;;  %v2306_v49 = vpop.f32.mrf.mxu2 }
 0x21d   :  { %v912_v22 = vsel %vm860_vm4, %v2306_v49, -inf }
 0x21e   :  { %v2310_v50 = vpop.eup %1769  ;;  %v995_v51 = vmul.f32 1.442695, %v960_v48  ;;  %913 = vmax.xlane.f32.xlu0 %v912_v22 }
 0x21f   :  { %v1059_v52 = vsel %vm860_vm4, %v2310_v50, 0.0 }
 0x220   :  { %1771 = vpow2.f32 %v995_v51  ;;  %1060 = vadd.xlane.f32.xlu2 %v1059_v52 }
 0x223   :  { %v875_v53 = vpop.xlane.xlu2 %874 }
 0x224   :  { %v961_v55 = vsub.f32 %v2226_v35, %v875_v53  ;;  %v2315_v56 = vpop.f32.mrf.mxu2 }
 0x225   :  { %v915_v26 = vsel %vm860_vm4, %v2315_v56, -inf }
 0x226   :  { %v2319_v57 = vpop.eup %1771  ;;  %v997_v60 = vmul.f32 1.442695, %v961_v55  ;;  %916 = vmax.xlane.f32.xlu1 %v915_v26 }
 0x227   :  { %v1062_v61 = vsel %vm860_vm4, %v2319_v57, 0.0 }
 0x228   :  { %1773 = vpow2.f32 %v997_v60  ;;  %1063 = vadd.xlane.f32.xlu0 %v1062_v61 }
 0x22b   :  { %v878_v62 = vpop.xlane.xlu0 %877 }
 0x22c   :  { %v962_v63 = vsub.f32 %v2231_v38, %v878_v62  ;;  %v2324_v2 = vpop.f32.mrf.mxu2 }
 0x22d   :  { %v918_v35 = vsel %vm860_vm4, %v2324_v2, -inf }
 0x22e   :  { %v2328_v4 = vpop.eup %1773  ;;  %v999_v0 = vmul.f32 1.442695, %v962_v63  ;;  %919 = vmax.xlane.f32.xlu2 %v918_v35 }
 0x22f   :  { %v1065_v6 = vsel %vm860_vm4, %v2328_v4, 0.0 }
 0x230   :  { %1775 = vpow2.f32 %v999_v0  ;;  %1066 = vadd.xlane.f32.xlu1 %v1065_v6 }
 0x233   :  { %v881_v7 = vpop.xlane.xlu1 %880 }
 0x234   :  { %v963_v59 = vsub.f32 %v2237_v45, %v881_v7  ;;  %v2333_v10 = vpop.f32.mrf.mxu2 }
 0x235   :  { %v921_v38 = vsel %vm860_vm4, %v2333_v10, -inf }
 0x236   :  { %v2337_v8 = vpop.eup %1775  ;;  %v1001_v9 = vmul.f32 1.442695, %v963_v59  ;;  %922 = vmax.xlane.f32.xlu0 %v921_v38 }
 0x237   :  { %v1068_v12 = vsel %vm860_vm4, %v2337_v8, 0.0 }
 0x238   :  { %1777 = vpow2.f32 %v1001_v9  ;;  %1069 = vadd.xlane.f32.xlu2 %v1068_v12 }
 0x23b   :  { %v884_v14 = vpop.xlane.xlu2 %883 }
 0x23c   :  { %v964_v16 = vsub.f32 %v2242_v47, %v884_v14  ;;  %v2342_v17 = vpop.f32.mrf.mxu2 }
 0x23d   :  { %v924_v45 = vsel %vm860_vm4, %v2342_v17, -inf }
 0x23e   :  { %v2346_v19 = vpop.eup %1777  ;;  %v1003_v20 = vmul.f32 1.442695, %v964_v16  ;;  %925 = vmax.xlane.f32.xlu1 %v924_v45 }
 0x23f   :  { %v1071_v21 = vsel %vm860_vm4, %v2346_v19, 0.0 }
 0x240   :  { %1779 = vpow2.f32 %v1003_v20  ;;  %1072 = vadd.xlane.f32.xlu0 %v1071_v21 }
 0x243   :  { %v887_v23 = vpop.xlane.xlu0 %886 }
 0x244   :  { %v965_v24 = vsub.f32 %v2248_v54, %v887_v23  ;;  %v2351_v27 = vpop.f32.mrf.mxu2 }
 0x245   :  { %v927_v47 = vsel %vm860_vm4, %v2351_v27, -inf }
 0x246   :  { %v2355_v28 = vpop.eup %1779  ;;  %v1005_v29 = vmul.f32 1.442695, %v965_v24  ;;  %928 = vmax.xlane.f32.xlu2 %v927_v47 }
 0x247   :  { %v1074_v30 = vsel %vm860_vm4, %v2355_v28, 0.0 }
 0x248   :  { %1781 = vpow2.f32 %v1005_v29  ;;  %1075 = vadd.xlane.f32.xlu1 %v1074_v30 }
 0x24b   :  { %v890_v31 = vpop.xlane.xlu1 %889 }
 0x24c   :  { %v966_v5 = vsub.f32 %v2253_v58, %v890_v31  ;;  %v2360_v36 = vpop.f32.mrf.mxu2 }
 0x24d   :  { %v930_v54 = vsel %vm860_vm4, %v2360_v36, -inf }
 0x24e   :  { %v2364_v37 = vpop.eup %1781  ;;  %v1007_v40 = vmul.f32 1.442695, %v966_v5  ;;  %931 = vmax.xlane.f32.xlu0 %v930_v54 }
 0x24f   :  { %v1077_v41 = vsel %vm860_vm4, %v2364_v37, 0.0 }
 0x250   :  { %1783 = vpow2.f32 %v1007_v40  ;;  %1078 = vadd.xlane.f32.xlu2 %v1077_v41 }
 0x253   :  { %v893_v11 = vpop.xlane.xlu2 %892 }
 0x254   :  { %v967_v42 = vsub.f32 %v2259_v3, %v893_v11  ;;  %v2369_v44 = vpop.f32.mrf.mxu2 }
 0x255   :  { %v933_v58 = vsel %vm860_vm4, %v2369_v44, -inf }
 0x256   :  { %v2373_v33 = vpop.eup %1783  ;;  %v1009_v15 = vmul.f32 1.442695, %v967_v42  ;;  %934 = vmax.xlane.f32.xlu1 %v933_v58 }
 0x257   :  { %v1080_v46 = vsel %vm860_vm4, %v2373_v33, 0.0 }
 0x258   :  { %1785 = vpow2.f32 %v1009_v15  ;;  %1081 = vadd.xlane.f32.xlu0 %v1080_v46 }
 0x25b   :  { %v896_v61 = vpop.xlane.xlu0 %895 }
 0x25c   :  { %v2377_v48 = vpop.f32.mrf.mxu2  ;;  %v968_v20 = vsub.f32 %v2264_v1, %v896_v61 }
 0x25d   :  { %v936_v22 = vsel %vm860_vm4, %v2377_v48, -inf }
 0x25e   :  { %v2381_v3 = vpop.eup %1785  ;;  %937 = vmax.xlane.f32.xlu2 %v936_v22  ;;  %v1011_v24 = vmul.f32 1.442695, %v968_v20 }
 0x25f   :  { %v1083_v51 = vsel %vm860_vm4, %v2381_v3, 0.0 }
 0x260   :  { %1084 = vadd.xlane.f32.xlu1 %v1083_v51 }
 0x263   :  { %v899_v60 = vpop.xlane.xlu1 %898 }
 0x264   :  { %v2385_v52 = vpop.f32.mrf.mxu2  ;;  %v969_v62 = vsub.f32 %v2270_v13, %v899_v60 }
 0x265   :  { %v939_v53 = vsel %vm860_vm4, %v2385_v52, -inf }
 0x266   :  { %940 = vmax.xlane.f32.xlu0 %v939_v53  ;;  %v1013_v6 = vmul.f32 1.442695, %v969_v62 }
 0x268   :  { %1787 = vpow2.f32 %v1013_v6 }
 0x26b   :  { %v902_v0 = vpop.xlane.xlu2 %901 }
 0x26c   :  { %v2389_v55 = vpop.f32.mrf.mxu2  ;;  %v970_v7 = vsub.f32 %v2275_v18, %v902_v0 }
 0x26d   :  { %v942_v26 = vsel %vm860_vm4, %v2389_v55, -inf }
 0x26e   :  { %943 = vmax.xlane.f32.xlu1 %v942_v26  ;;  %v1015_v14 = vmul.f32 1.442695, %v970_v7  ;;  %v2404_v45 = vpop.eup %1787 }
 0x270   :  { %1789 = vpow2.f32 %v1015_v14 }
 0x273   :  { %v905_v59 = vpop.xlane.xlu0 %904 }
 0x274   :  { %v2394_v63 = vpop.f32.mrf.mxu2  ;;  %v971_v40 = vsub.f32 %v2281_v25, %v905_v59 }
 0x275   :  { %v945_v35 = vsel %vm860_vm4, %v2394_v63, -inf }
 0x276   :  { %946 = vmax.xlane.f32.xlu2 %v945_v35  ;;  %v2413_v47 = vpop.eup %1789  ;;  %v1017_v53 = vmul.f32 1.442695, %v971_v40 }
 0x277   :  { %v1092_v15 = vsel %vm860_vm4, %v2413_v47, 0.0 }
 0x27b   :  { %v908_v38 = vpop.xlane.xlu1 %907 }
 0x27c   :  { %v972_v9 = vsub.f32 %v2287_v34, %v908_v38  ;;  %v2400_v12 = vpop.f32.mrf.mxu2  ;;  %v1089_v34 = vsel %vm860_vm4, %v2404_v45, 0.0 }
 0x27d   :  { %v948_v13 = vsel %vm860_vm4, %v2400_v12, -inf }
 0x27e   :  { %949 = vmax.xlane.f32.xlu0 %v948_v13  ;;  %v1019_v16 = vmul.f32 1.442695, %v972_v9 }
 0x280   :  { %1791 = vpow2.f32 %v1019_v16 }
 0x283   :  { %v1055_v18 = vpop.xlane.xlu0 %1054 }
 0x284   :  { %1793 = vrcp.f32 %v1055_v18  ;;  %v2407_v21 = vpop.f32.mrf.mxu2  ;;  %v1158_v25 = vand.u32 2147483647, %v1055_v18  ;;  %vm1154_vm6 = vweird.f32 %v1055_v18 }
 0x285   :  { %v951_v23 = vsel %vm860_vm4, %v2407_v21, -inf  ;;  %1795 = vpow2.f32 %v1011_v24 }
 0x286   :  { %1090 = vadd.xlane.f32.xlu0 %v1089_v34  ;;  %952 = vmax.xlane.f32.xlu1 %v951_v23  ;;  %v2415_v29 = vpop.eup %1791  ;;  %vm1159_vm8 = vcmp.eq.f32.partialorder %v1158_v25, 8.507059e+37 }
 0x287   :  { %v1098_v58 = vsel %vm860_vm4, %v2415_v29, 0.0 }
 0x289   :  { %v911_v30 = vpop.xlane.xlu2 %910 }
 0x28a   :  { %v1794_v1 = vpop.eup %1793  ;;  %v973_v31 = vsub.f32 %v2297_v43, %v911_v30  ;;  %v1160_v43 = vand.u32 2147483648, %v1055_v18 }
 0x28b   :  { %v1150_v5 = vmul.f32 %v1794_v1, %v1055_v18  ;;  %v1058_v54 = vpop.xlane.xlu1 %1057  ;;  %vm1155_vm5 = vweird.f32 %v1794_v1  ;;  %v2427_v51 = vpop.eup %1795 }
 0x28c   :  { %v1021_v41 = vmul.f32 1.442695, %v973_v31  ;;  %1797 = vrcp.f32 %v1058_v54  ;;  %v2419_v11 = vpop.f32.mrf.mxu2  ;;  %vm1156_vm7 = vmor %vm1154_vm6, %vm1155_vm5  ;;  %v1161_v61 = vor.u32 1.1754944e-38, %v1160_v43  ;;  %v1175_v14 = vand.u32 2147483648, %v1058_v54 }
 0x28d   :  { %v1151_v42 = vsub.f32 1.0, %v1150_v5  ;;  %v954_v46 = vsel %vm860_vm4, %v2419_v11, -inf  ;;  %v1086_v20 = vsel %vm860_vm4, %v2427_v51, 0.0  ;;  %v1173_v34 = vand.u32 2147483647, %v1058_v54 }
 0x28e   :  { %1799 = vpow2.f32 %v1021_v41  ;;  %1099 = vadd.xlane.f32.xlu0 %v1098_v58  ;;  %1093 = vadd.xlane.f32.xlu1 %v1092_v15  ;;  %vm1169_vm10 = vweird.f32 %v1058_v54  ;;  %v1176_v30 = vor.u32 1.1754944e-38, %v1175_v14 }
 0x28f   :  { %v1152_v22 = vmul.f32 %v1794_v1, %v1151_v42  ;;  %955 = vmax.xlane.f32.xlu2 %v954_v46  ;;  %vm1174_vm12 = vcmp.eq.f32.partialorder %v1173_v34, 8.507059e+37 }
 0x291   :  { %v1153_v26 = vadd.f32 %v1794_v1, %v1152_v22  ;;  %v914_v62 = vpop.xlane.xlu0 %913 }
 0x292   :  { %v1798_v60 = vpop.eup %1797  ;;  %v974_v13 = vsub.f32 %v2306_v49, %v914_v62 }
 0x293   :  { %v1157_v35 = vsel %vm1156_vm7, %v1794_v1, %v1153_v26  ;;  %v1165_v0 = vmul.f32 %v1798_v60, %v1058_v54  ;;  %v1061_v6 = vpop.xlane.xlu2 %1060  ;;  %vm1170_vm9 = vweird.f32 %v1798_v60 }
 0x294   :  { %v2429_v7 = vpop.eup %1799  ;;  %v1162_v59 = vsel %vm1159_vm8, %v1161_v61, %v1157_v35  ;;  %1801 = vrcp.f32 %v1061_v6  ;;  %v1023_v49 = vmul.f32 1.442695, %v974_v13  ;;  %vm1171_vm11 = vmor %vm1169_vm10, %vm1170_vm9  ;;  %v1190_v46 = vand.u32 2147483648, %v1061_v6 }
 0x295   :  { %1803 = vpow2.f32 %v1017_v53  ;;  %v1163_v38 = vmul.f32 %v2292_v39, %v1162_v59  ;;  %v1166_v9 = vsub.f32 1.0, %v1165_v0  ;;  %v1101_v16 = vsel %vm860_vm4, %v2429_v7, 0.0 }
 0x296   :  { %1102 = vadd.xlane.f32.xlu1 %v1101_v16  ;;  %v1188_v22 = vand.u32 2147483647, %v1061_v6  ;;  %vm1184_vm14 = vweird.f32 %v1061_v6  ;;  %v1191_v26 = vor.u32 1.1754944e-38, %v1190_v46 }
 0x297   :  { %1629 = vst.msk [vmem:[%s2686_s5] sm:$0xff] %vm860_vm4, %v1163_v38  ;;  %v1167_v18 = vmul.f32 %v1798_v60, %v1166_v9  ;;  %1087 = vadd.xlane.f32.xlu2 %v1086_v20 }
 0x298   :  { %vm1189_vm0 = vcmp.eq.f32.partialorder %v1188_v22, 8.507059e+37 }
 0x299   :  { %v1168_v39 = vadd.f32 %v1798_v60, %v1167_v18  ;;  %v917_v23 = vpop.xlane.xlu1 %916 }
 0x29a   :  { %v1802_v24 = vpop.eup %1801  ;;  %v975_v1 = vsub.f32 %v2315_v56, %v917_v23 }
 0x29b   :  { %v2442_v31 = vpop.eup %1803  ;;  %v1172_v5 = vsel %vm1171_vm11, %v1798_v60, %v1168_v39  ;;  %v1180_v40 = vmul.f32 %v1802_v24, %v1061_v6  ;;  %v1064_v41 = vpop.xlane.xlu0 %1063  ;;  %vm1185_vm13 = vweird.f32 %v1802_v24 }
 0x29c   :  { %v1177_v42 = vsel %vm1174_vm12, %v1176_v30, %v1172_v5  ;;  %v1025_v58 = vmul.f32 1.442695, %v975_v1  ;;  %1805 = vrcp.f32 %v1064_v41  ;;  %v1095_v43 = vsel %vm860_vm4, %v2442_v31, 0.0  ;;  %vm1186_vm15 = vmor %vm1184_vm14, %vm1185_vm13 }
 0x29d   :  { %v1178_v15 = vmul.f32 %v2301_v32, %v1177_v42  ;;  %1807 = vpow2.f32 %v1023_v49  ;;  %v1181_v54 = vsub.f32 1.0, %v1180_v40  ;;  %v1205_v14 = vand.u32 2147483648, %v1064_v41 }
 0x29e   :  { %1809 = vpow2.f32 %v1025_v58  ;;  %v1203_v18 = vand.u32 2147483647, %v1064_v41  ;;  %vm1199_vm2 = vweird.f32 %v1064_v41 }
 0x29f   :  { %1630 = vst.msk [vmem:[%s2686_s5 + $0x8] sm:$0xff] %vm860_vm4, %v1178_v15  ;;  %v1182_v56 = vmul.f32 %v1802_v24, %v1181_v54  ;;  %1096 = vadd.xlane.f32.xlu2 %v1095_v43  ;;  %v1206_v49 = vor.u32 1.1754944e-38, %v1205_v14 }
 0x2a0   :  { %vm1204_vm5 = vcmp.eq.f32.partialorder %v1203_v18, 8.507059e+37 }
 0x2a1   :  { %v1183_v25 = vadd.f32 %v1802_v24, %v1182_v56  ;;  %v920_v53 = vpop.xlane.xlu2 %919 }
 0x2a2   :  { %v1806_v32 = vpop.eup %1805  ;;  %v976_v60 = vsub.f32 %v2324_v2, %v920_v53 }
 0x2a3   :  { %v2452_v61 = vpop.eup %1807  ;;  %v1187_v62 = vsel %vm1186_vm15, %v1802_v24, %v1183_v25  ;;  %v1195_v35 = vmul.f32 %v1806_v32, %v1064_v41  ;;  %v1067_v0 = vpop.xlane.xlu1 %1066  ;;  %vm1200_vm1 = vweird.f32 %v1806_v32 }
 0x2a4   :  { %v2454_v59 = vpop.eup %1809  ;;  %v1192_v38 = vsel %vm1189_vm0, %v1191_v26, %v1187_v62  ;;  %v1027_v9 = vmul.f32 1.442695, %v976_v60  ;;  %1811 = vrcp.f32 %v1067_v0  ;;  %v1104_v2 = vsel %vm860_vm4, %v2452_v61, 0.0  ;;  %vm1201_vm3 = vmor %vm1199_vm2, %vm1200_vm1 }
 0x2a5   :  { %v1193_v13 = vmul.f32 %v2310_v50, %v1192_v38  ;;  %v1196_v6 = vsub.f32 1.0, %v1195_v35  ;;  %v1107_v16 = vsel %vm860_vm4, %v2454_v59, 0.0  ;;  %v1220_v54 = vand.u32 2147483648, %v1067_v0 }
 0x2a6   :  { %1813 = vpow2.f32 %v1027_v9  ;;  %1108 = vadd.xlane.f32.xlu0 %v1107_v16  ;;  %v1218_v46 = vand.u32 2147483647, %v1067_v0  ;;  %vm1214_vm7 = vweird.f32 %v1067_v0 }
 0x2a7   :  { %1631 = vst.msk [vmem:[%s2686_s5 + $0x10] sm:$0xff] %vm860_vm4, %v1193_v13  ;;  %v1197_v20 = vmul.f32 %v1806_v32, %v1196_v6  ;;  %1105 = vadd.xlane.f32.xlu2 %v1104_v2 }
 0x2a8   :  { %vm1219_vm9 = vcmp.eq.f32.partialorder %v1218_v46, 8.507059e+37 }
 0x2a9   :  { %v1198_v50 = vadd.f32 %v1806_v32, %v1197_v20  ;;  %v923_v34 = vpop.xlane.xlu0 %922 }
 0x2aa   :  { %v1812_v39 = vpop.eup %1811  ;;  %v977_v23 = vsub.f32 %v2333_v10, %v923_v34 }
 0x2ab   :  { %v1202_v24 = vsel %vm1201_vm3, %v1806_v32, %v1198_v50  ;;  %v1210_v30 = vmul.f32 %v1812_v39, %v1067_v0  ;;  %v1070_v1 = vpop.xlane.xlu2 %1069  ;;  %vm1215_vm6 = vweird.f32 %v1812_v39 }
 0x2ac   :  { %v2466_v5 = vpop.eup %1813  ;;  %v1207_v40 = vsel %vm1204_vm5, %v1206_v49, %v1202_v24  ;;  %v1029_v42 = vmul.f32 1.442695, %v977_v23  ;;  %1815 = vrcp.f32 %v1070_v1  ;;  %vm1216_vm8 = vmor %vm1214_vm7, %vm1215_vm6  ;;  %v1235_v13 = vand.u32 2147483648, %v1070_v1 }
 0x2ad   :  { %v1208_v58 = vmul.f32 %v2319_v57, %v1207_v40  ;;  %v1211_v15 = vsub.f32 1.0, %v1210_v30  ;;  %v1110_v41 = vsel %vm860_vm4, %v2466_v5, 0.0  ;;  %v1221_v57 = vor.u32 1.1754944e-38, %v1220_v54 }
 0x2ae   :  { %1817 = vpow2.f32 %v1029_v42  ;;  %1111 = vadd.xlane.f32.xlu1 %v1110_v41  ;;  %v1233_v6 = vand.u32 2147483647, %v1070_v1  ;;  %vm1229_vm11 = vweird.f32 %v1070_v1 }
 0x2af   :  { %1632 = vst.msk [vmem:[%s2686_s5 + $0x18] sm:$0xff] %vm860_vm4, %v1208_v58  ;;  %v1212_v10 = vmul.f32 %v1812_v39, %v1211_v15 }
 0x2b0   :  { %vm1234_vm13 = vcmp.eq.f32.partialorder %v1233_v6, 8.507059e+37 }
 0x2b1   :  { %v1213_v43 = vadd.f32 %v1812_v39, %v1212_v10  ;;  %v926_v56 = vpop.xlane.xlu1 %925 }
 0x2b2   :  { %v1816_v22 = vpop.eup %1815  ;;  %v978_v25 = vsub.f32 %v2342_v17, %v926_v56 }
 0x2b3   :  { %v1217_v53 = vsel %vm1216_vm8, %v1812_v39, %v1213_v43  ;;  %v1225_v32 = vmul.f32 %v1816_v22, %v1070_v1  ;;  %v1073_v26 = vpop.xlane.xlu0 %1072  ;;  %vm1230_vm10 = vweird.f32 %v1816_v22 }
 0x2b4   :  { %v2476_v60 = vpop.eup %1817  ;;  %v1222_v62 = vsel %vm1219_vm9, %v1221_v57, %v1217_v53  ;;  %v1031_v35 = vmul.f32 1.442695, %v978_v25  ;;  %1819 = vrcp.f32 %v1073_v26  ;;  %vm1231_vm12 = vmor %vm1229_vm11, %vm1230_vm10  ;;  %v1250_v40 = vand.u32 2147483648, %v1073_v26 }
 0x2b5   :  { %v1223_v38 = vmul.f32 %v2328_v4, %v1222_v62  ;;  %v1226_v9 = vsub.f32 1.0, %v1225_v32  ;;  %v1113_v0 = vsel %vm860_vm4, %v2476_v60, 0.0  ;;  %v1236_v4 = vor.u32 1.1754944e-38, %v1235_v13 }
 0x2b6   :  { %1821 = vpow2.f32 %v1031_v35  ;;  %1114 = vadd.xlane.f32.xlu2 %v1113_v0  ;;  %v1248_v42 = vand.u32 2147483647, %v1073_v26  ;;  %vm1244_vm15 = vweird.f32 %v1073_v26 }
 0x2b7   :  { %1633 = vst.msk [vmem:[%s2686_s5 + $0x20] sm:$0xff] %vm860_vm4, %v1223_v38  ;;  %v1227_v17 = vmul.f32 %v1816_v22, %v1226_v9 }
 0x2b8   :  { %vm1249_vm1 = vcmp.eq.f32.partialorder %v1248_v42, 8.507059e+37 }
 0x2b9   :  { %v1228_v14 = vadd.f32 %v1816_v22, %v1227_v17  ;;  %v929_v16 = vpop.xlane.xlu2 %928 }
 0x2ba   :  { %v1820_v2 = vpop.eup %1819  ;;  %v979_v20 = vsub.f32 %v2351_v27, %v929_v16 }
 0x2bb   :  { %v1232_v18 = vsel %vm1231_vm12, %v1816_v22, %v1228_v14  ;;  %v1240_v50 = vmul.f32 %v1820_v2, %v1073_v26  ;;  %v1076_v34 = vpop.xlane.xlu1 %1075  ;;  %vm1245_vm14 = vweird.f32 %v1820_v2 }
 0x2bc   :  { %v2486_v39 = vpop.eup %1821  ;;  %v1237_v49 = vsel %vm1234_vm13, %v1236_v4, %v1232_v18  ;;  %v1033_v23 = vmul.f32 1.442695, %v979_v20  ;;  %1823 = vrcp.f32 %v1076_v34  ;;  %vm1246_vm0 = vmor %vm1244_vm15, %vm1245_vm14  ;;  %v1265_v32 = vand.u32 2147483648, %v1076_v34 }
 0x2bd   :  { %v1238_v24 = vmul.f32 %v2337_v8, %v1237_v49  ;;  %v1241_v30 = vsub.f32 1.0, %v1240_v50  ;;  %v1116_v1 = vsel %vm860_vm4, %v2486_v39, 0.0  ;;  %v1251_v8 = vor.u32 1.1754944e-38, %v1250_v40 }
 0x2be   :  { %1825 = vpow2.f32 %v1033_v23  ;;  %1117 = vadd.xlane.f32.xlu0 %v1116_v1  ;;  %v1263_v62 = vand.u32 2147483647, %v1076_v34  ;;  %vm1259_vm3 = vweird.f32 %v1076_v34 }
 0x2bf   :  { %1634 = vst.msk [vmem:[%s2686_s5 + $0x28] sm:$0xff] %vm860_vm4, %v1238_v24  ;;  %v1242_v27 = vmul.f32 %v1820_v2, %v1241_v30 }
 0x2c0   :  { %vm1264_vm6 = vcmp.eq.f32.partialorder %v1263_v62, 8.507059e+37 }
 0x2c1   :  { %v1243_v58 = vadd.f32 %v1820_v2, %v1242_v27  ;;  %v932_v15 = vpop.xlane.xlu0 %931 }
 0x2c2   :  { %v1824_v54 = vpop.eup %1823  ;;  %v980_v41 = vsub.f32 %v2360_v36, %v932_v15 }
 0x2c3   :  { %v1247_v10 = vsel %vm1246_vm0, %v1820_v2, %v1243_v58  ;;  %v1255_v46 = vmul.f32 %v1824_v54, %v1076_v34  ;;  %v1079_v43 = vpop.xlane.xlu2 %1078  ;;  %vm1260_vm2 = vweird.f32 %v1824_v54 }
 0x2c4   :  { %v2496_v56 = vpop.eup %1825  ;;  %v1252_v22 = vsel %vm1249_vm1, %v1251_v8, %v1247_v10  ;;  %v1035_v57 = vmul.f32 1.442695, %v980_v41  ;;  %1827 = vrcp.f32 %v1079_v43  ;;  %vm1261_vm5 = vmor %vm1259_vm3, %vm1260_vm2  ;;  %v1280_v18 = vand.u32 2147483648, %v1079_v43 }
 0x2c5   :  { %v1253_v25 = vmul.f32 %v2346_v19, %v1252_v22  ;;  %v1256_v53 = vsub.f32 1.0, %v1255_v46  ;;  %v1119_v26 = vsel %vm860_vm4, %v2496_v56, 0.0  ;;  %v1266_v19 = vor.u32 1.1754944e-38, %v1265_v32 }
 0x2c6   :  { %1829 = vpow2.f32 %v1035_v57  ;;  %1120 = vadd.xlane.f32.xlu1 %v1119_v26  ;;  %v1278_v34 = vand.u32 2147483647, %v1079_v43  ;;  %vm1274_vm8 = vweird.f32 %v1079_v43 }
 0x2c7   :  { %1635 = vst.msk [vmem:[%s2686_s5 + $0x30] sm:$0xff] %vm860_vm4, %v1253_v25  ;;  %v1257_v36 = vmul.f32 %v1824_v54, %v1256_v53 }
 0x2c8   :  { %vm1279_vm10 = vcmp.eq.f32.partialorder %v1278_v34, 8.507059e+37 }
 0x2c9   :  { %v1258_v35 = vadd.f32 %v1824_v54, %v1257_v36  ;;  %v935_v38 = vpop.xlane.xlu1 %934 }
 0x2ca   :  { %v1828_v9 = vpop.eup %1827  ;;  %v981_v13 = vsub.f32 %v2369_v44, %v935_v38 }
 0x2cb   :  { %v1262_v0 = vsel %vm1261_vm5, %v1824_v54, %v1258_v35  ;;  %v1270_v17 = vmul.f32 %v1828_v9, %v1079_v43  ;;  %v1082_v6 = vpop.xlane.xlu0 %1081  ;;  %vm1275_vm7 = vweird.f32 %v1828_v9 }
 0x2cc   :  { %v2506_v14 = vpop.eup %1829  ;;  %v1267_v16 = vsel %vm1264_vm6, %v1266_v19, %v1262_v0  ;;  %v1037_v2 = vmul.f32 1.442695, %v981_v13  ;;  %1831 = vrcp.f32 %v1082_v6  ;;  %vm1276_vm9 = vmor %vm1274_vm8, %vm1275_vm7  ;;  %v1295_v41 = vand.u32 2147483648, %v1082_v6 }
 0x2cd   :  { %v1268_v4 = vmul.f32 %v2355_v28, %v1267_v16  ;;  %v1271_v20 = vsub.f32 1.0, %v1270_v17  ;;  %v1122_v50 = vsel %vm860_vm4, %v2506_v14, 0.0  ;;  %v1281_v28 = vor.u32 1.1754944e-38, %v1280_v18 }
 0x2ce   :  { %1833 = vpow2.f32 %v1037_v2  ;;  %1123 = vadd.xlane.f32.xlu2 %v1122_v50  ;;  %v1293_v46 = vand.u32 2147483647, %v1082_v6  ;;  %vm1289_vm12 = vweird.f32 %v1082_v6 }
 0x2cf   :  { %1636 = vst.msk [vmem:[%s2686_s5 + $0x38] sm:$0xff] %vm860_vm4, %v1268_v4  ;;  %v1272_v44 = vmul.f32 %v1828_v9, %v1271_v20 }
 0x2d0   :  { %vm1294_vm14 = vcmp.eq.f32.partialorder %v1293_v46, 8.507059e+37 }
 0x2d1   :  { %v1273_v49 = vadd.f32 %v1828_v9, %v1272_v44  ;;  %v938_v23 = vpop.xlane.xlu2 %937 }
 0x2d2   :  { %v1832_v24 = vpop.eup %1831  ;;  %v982_v30 = vsub.f32 %v2377_v48, %v938_v23 }
 0x2d3   :  { %v1277_v40 = vsel %vm1276_vm9, %v1828_v9, %v1273_v49  ;;  %v1285_v1 = vmul.f32 %v1832_v24, %v1082_v6  ;;  %v1085_v27 = vpop.xlane.xlu1 %1084  ;;  %vm1290_vm11 = vweird.f32 %v1832_v24 }
 0x2d4   :  { %v2516_v42 = vpop.eup %1833  ;;  %v1282_v58 = vsel %vm1279_vm10, %v1281_v28, %v1277_v40  ;;  %v1039_v15 = vmul.f32 1.442695, %v982_v30  ;;  %1835 = vrcp.f32 %v1085_v27  ;;  %vm1291_vm13 = vmor %vm1289_vm12, %vm1290_vm11  ;;  %v1310_v19 = vand.u32 2147483648, %v1085_v27 }
 0x2d5   :  { %v1283_v54 = vmul.f32 %v2364_v37, %v1282_v58  ;;  %v1286_v8 = vsub.f32 1.0, %v1285_v1  ;;  %v1125_v10 = vsel %vm860_vm4, %v2516_v42, 0.0  ;;  %v1296_v37 = vor.u32 1.1754944e-38, %v1295_v41 }
 0x2d6   :  { %1837 = vpow2.f32 %v1039_v15  ;;  %1126 = vadd.xlane.f32.xlu0 %v1125_v10  ;;  %v1308_v13 = vand.u32 2147483647, %v1085_v27  ;;  %vm1304_vm0 = vweird.f32 %v1085_v27 }
 0x2d7   :  { %1637 = vst.msk [vmem:[%s2686_s5 + $0x40] sm:$0xff] %vm860_vm4, %v1283_v54  ;;  %v1287_v48 = vmul.f32 %v1832_v24, %v1286_v8 }
 0x2d8   :  { %vm1309_vm2 = vcmp.eq.f32.partialorder %v1308_v13, 8.507059e+37 }
 0x2d9   :  { %v1288_v43 = vadd.f32 %v1832_v24, %v1287_v48  ;;  %v941_v22 = vpop.xlane.xlu0 %940 }
 0x2da   :  { %v1836_v57 = vpop.eup %1835  ;;  %v983_v25 = vsub.f32 %v2385_v52, %v941_v22 }
 0x2db   :  { %v1292_v53 = vsel %vm1291_vm13, %v1832_v24, %v1288_v43  ;;  %v1300_v32 = vmul.f32 %v1836_v57, %v1085_v27  ;;  %vm1305_vm15 = vweird.f32 %v1836_v57 }
 0x2dc   :  { %v2526_v26 = vpop.eup %1837  ;;  %v1297_v36 = vsel %vm1294_vm14, %v1296_v37, %v1292_v53  ;;  %v1041_v62 = vmul.f32 1.442695, %v983_v25  ;;  %vm1306_vm1 = vmor %vm1304_vm0, %vm1305_vm15 }
 0x2dd   :  { %v1298_v35 = vmul.f32 %v2373_v33, %v1297_v36  ;;  %v1301_v38 = vsub.f32 1.0, %v1300_v32  ;;  %v1128_v9 = vsel %vm860_vm4, %v2526_v26, 0.0  ;;  %v1311_v33 = vor.u32 1.1754944e-38, %v1310_v19 }
 0x2de   :  { %1839 = vpow2.f32 %v1041_v62  ;;  %1129 = vadd.xlane.f32.xlu1 %v1128_v9 }
 0x2df   :  { %1638 = vst.msk [vmem:[%s2686_s5 + $0x48] sm:$0xff] %vm860_vm4, %v1298_v35  ;;  %v1302_v52 = vmul.f32 %v1836_v57, %v1301_v38 }
 0x2e1   :  { %v1303_v0 = vadd.f32 %v1836_v57, %v1302_v52  ;;  %v944_v17 = vpop.xlane.xlu1 %943 }
 0x2e2   :  { %v984_v6 = vsub.f32 %v2389_v55, %v944_v17 }
 0x2e3   :  { %v1307_v16 = vsel %vm1306_vm1, %v1836_v57, %v1303_v0 }
 0x2e4   :  { %v2536_v2 = vpop.eup %1839  ;;  %v1312_v4 = vsel %vm1309_vm2, %v1311_v33, %v1307_v16  ;;  %v1043_v20 = vmul.f32 1.442695, %v984_v6 }
 0x2e5   :  { %v1313_v18 = vmul.f32 %v2381_v3, %v1312_v4  ;;  %v1131_v50 = vsel %vm860_vm4, %v2536_v2, 0.0 }
 0x2e6   :  { %1841 = vpow2.f32 %v1043_v20  ;;  %1132 = vadd.xlane.f32.xlu2 %v1131_v50 }
 0x2e7   :  { %1639 = vst.msk [vmem:[%s2686_s5 + $0x50] sm:$0xff] %vm860_vm4, %v1313_v18 }
 0x2e9   :  { %v947_v44 = vpop.xlane.xlu2 %946 }
 0x2ea   :  { %v985_v55 = vsub.f32 %v2394_v63, %v947_v44 }
 0x2ec   :  { %v2546_v34 = vpop.eup %1841  ;;  %v1045_v49 = vmul.f32 1.442695, %v985_v55 }
 0x2ed   :  { %v1134_v23 = vsel %vm860_vm4, %v2546_v34, 0.0 }
 0x2ee   :  { %1843 = vpow2.f32 %v1045_v49  ;;  %1135 = vadd.xlane.f32.xlu0 %v1134_v23 }
 0x2f1   :  { %v950_v3 = vpop.xlane.xlu0 %949 }
 0x2f2   :  { %v986_v24 = vsub.f32 %v2400_v12, %v950_v3 }
 0x2f4   :  { %v2551_v28 = vpop.eup %1843  ;;  %v1047_v30 = vmul.f32 1.442695, %v986_v24 }
 0x2f5   :  { %v1137_v40 = vsel %vm860_vm4, %v2551_v28, 0.0 }
 0x2f6   :  { %1845 = vpow2.f32 %v1047_v30  ;;  %1138 = vadd.xlane.f32.xlu1 %v1137_v40 }
 0x2f9   :  { %v953_v63 = vpop.xlane.xlu1 %952  ;;  %v1091_v1 = vpop.xlane.xlu0 %1090 }
 0x2fa   :  { %v987_v27 = vsub.f32 %v2407_v21, %v953_v63  ;;  %1847 = vrcp.f32 %v1091_v1  ;;  %v1338_v22 = vand.u32 2147483647, %v1091_v1  ;;  %v1340_v57 = vand.u32 2147483648, %v1091_v1 }
 0x2fb   :  { %vm1334_vm5 = vweird.f32 %v1091_v1 }
 0x2fc   :  { %v2556_v58 = vpop.eup %1845  ;;  %v1049_v15 = vmul.f32 1.442695, %v987_v27  ;;  %v1341_v62 = vor.u32 1.1754944e-38, %v1340_v57  ;;  %vm1339_vm7 = vcmp.eq.f32.partialorder %v1338_v22, 8.507059e+37 }
 0x2fd   :  { %v1140_v54 = vsel %vm860_vm4, %v2556_v58, 0.0 }
 0x2fe   :  { %1849 = vpow2.f32 %v1049_v15  ;;  %1141 = vadd.xlane.f32.xlu2 %v1140_v54 }
 0x300   :  { %v1848_v12 = vpop.eup %1847 }
 0x301   :  { %v1330_v8 = vmul.f32 %v1848_v12, %v1091_v1  ;;  %v1094_v41 = vpop.xlane.xlu1 %1093  ;;  %v1100_v10 = vpop.xlane.xlu0 %1099  ;;  %vm1335_vm3 = vweird.f32 %v1848_v12 }
 0x302   :  { %1851 = vrcp.f32 %v1094_v41  ;;  %v956_v48 = vpop.xlane.xlu2 %955  ;;  %vm1336_vm6 = vmor %vm1334_vm5, %vm1335_vm3  ;;  %v1355_v33 = vand.u32 2147483648, %v1094_v41  ;;  %v1353_v20 = vand.u32 2147483647, %v1094_v41  ;;  %v1385_v18 = vand.u32 2147483648, %v1100_v10 }
 0x303   :  { %v1331_v46 = vsub.f32 1.0, %v1330_v8  ;;  %v988_v43 = vsub.f32 %v2419_v11, %v956_v48  ;;  %1853 = vrcp.f32 %v1100_v10  ;;  %vm1349_vm10 = vweird.f32 %v1094_v41 }
 0x304   :  { %v2561_v21 = vpop.eup %1849  ;;  %v1356_v49 = vor.u32 1.1754944e-38, %v1355_v33  ;;  %vm1379_vm12 = vweird.f32 %v1100_v10  ;;  %vm1354_vm13 = vcmp.eq.f32.partialorder %v1353_v20, 8.507059e+37  ;;  %v1386_v30 = vor.u32 1.1754944e-38, %v1385_v18 }
 0x305   :  { %v1332_v37 = vmul.f32 %v1848_v12, %v1331_v46  ;;  %v1051_v25 = vmul.f32 1.442695, %v988_v43  ;;  %v1143_v53 = vsel %vm860_vm4, %v2561_v21, 0.0 }
 0x306   :  { %1144 = vadd.xlane.f32.xlu0 %v1143_v53 }
 0x307   :  { %v1333_v32 = vadd.f32 %v1848_v12, %v1332_v37  ;;  %1855 = vpow2.f32 %v1051_v25 }
 0x308   :  { %v1852_v36 = vpop.eup %1851 }
 0x309   :  { %v1854_v35 = vpop.eup %1853  ;;  %v1337_v11 = vsel %vm1336_vm6, %v1848_v12, %v1333_v32  ;;  %v1345_v38 = vmul.f32 %v1852_v36, %v1094_v41  ;;  %v1103_v52 = vpop.xlane.xlu1 %1102  ;;  %vm1350_vm8 = vweird.f32 %v1852_v36 }
 0x30a   :  { %v1342_v9 = vsel %vm1339_vm7, %v1341_v62, %v1337_v11  ;;  %v1375_v19 = vmul.f32 %v1854_v35, %v1100_v10  ;;  %v2565_v13 = vpop.xlane.xlu2 %1087  ;;  %1857 = vrcp.f32 %v1103_v52  ;;  %vm1380_vm9 = vweird.f32 %v1854_v35  ;;  %vm1351_vm11 = vmor %vm1349_vm10, %vm1350_vm8 }
 0x30b   :  { %v1343_v0 = vmul.f32 %v2404_v45, %v1342_v9  ;;  %v1346_v17 = vsub.f32 1.0, %v1345_v38  ;;  %1859 = vrcp.f32 %v2565_v13  ;;  %v1383_v45 = vand.u32 2147483647, %v1100_v10  ;;  %vm1381_vm14 = vmor %vm1379_vm12, %vm1380_vm9 }
 0x30c   :  { %v1376_v6 = vsub.f32 1.0, %v1375_v19  ;;  %v1400_v10 = vand.u32 2147483648, %v1103_v52  ;;  %v1398_v43 = vand.u32 2147483647, %v1103_v52  ;;  %v1325_v22 = vand.u32 2147483648, %v2565_v13 }
 0x30d   :  { %v2569_v16 = vpop.eup %1855  ;;  %1641 = vst.msk [vmem:[%s2686_s5 + $0x60] sm:$0xff] %vm860_vm4, %v1343_v0  ;;  %v1347_v4 = vmul.f32 %v1852_v36, %v1346_v17  ;;  %vm1384_vm15 = vcmp.eq.f32.partialorder %v1383_v45, 8.507059e+37  ;;  %v1323_v57 = vand.u32 2147483647, %v2565_v13  ;;  %vm1394_vm2 = vweird.f32 %v1103_v52 }
 0x30e   :  { %v1377_v50 = vmul.f32 %v1854_v35, %v1376_v6  ;;  %v1146_v44 = vsel %vm860_vm4, %v2569_v16, 0.0  ;;  %v1401_v25 = vor.u32 1.1754944e-38, %v1400_v10  ;;  %vm1319_vm5 = vweird.f32 %v2565_v13 }
 0x30f   :  { %v1348_v55 = vadd.f32 %v1852_v36, %v1347_v4  ;;  %1147 = vadd.xlane.f32.xlu1 %v1146_v44  ;;  %vm1399_vm6 = vcmp.eq.f32.partialorder %v1398_v43, 8.507059e+37  ;;  %v1326_v62 = vor.u32 1.1754944e-38, %v1325_v22  ;;  %vm1324_vm8 = vcmp.eq.f32.partialorder %v1323_v57, 8.507059e+37 }
 0x310   :  { %v1378_v23 = vadd.f32 %v1854_v35, %v1377_v50  ;;  %v1858_v3 = vpop.eup %1857 }
 0x311   :  { %v1352_v24 = vsel %vm1351_vm11, %v1852_v36, %v1348_v55  ;;  %v1860_v40 = vpop.eup %1859  ;;  %v1390_v27 = vmul.f32 %v1858_v3, %v1103_v52  ;;  %vm1395_vm0 = vweird.f32 %v1858_v3 }
 0x312   :  { %v1357_v63 = vsel %vm1354_vm13, %v1356_v49, %v1352_v24  ;;  %v1382_v1 = vsel %vm1381_vm14, %v1854_v35, %v1378_v23  ;;  %v1097_v15 = vpop.xlane.xlu2 %1096  ;;  %v1315_v8 = vmul.f32 %v1860_v40, %v2565_v13  ;;  %vm1320_vm1 = vweird.f32 %v1860_v40  ;;  %vm1396_vm3 = vmor %vm1394_vm2, %vm1395_vm0 }
 0x313   :  { %v1358_v54 = vmul.f32 %v2413_v47, %v1357_v63  ;;  %v1387_v12 = vsel %vm1384_vm15, %v1386_v30, %v1382_v1  ;;  %v1391_v48 = vsub.f32 1.0, %v1390_v27  ;;  %1861 = vrcp.f32 %v1097_v15  ;;  %vm1321_vm7 = vmor %vm1319_vm5, %vm1320_vm1 }
 0x314   :  { %v1388_v41 = vmul.f32 %v2415_v29, %v1387_v12  ;;  %v1316_v46 = vsub.f32 1.0, %v1315_v8  ;;  %v1370_v13 = vand.u32 2147483648, %v1097_v15  ;;  %vm1364_vm10 = vweird.f32 %v1097_v15 }
 0x315   :  { %1642 = vst.msk [vmem:[%s2686_s5 + $0x68] sm:$0xff] %vm860_vm4, %v1358_v54  ;;  %v1392_v47 = vmul.f32 %v1858_v3, %v1391_v48 }
 0x316   :  { %1644 = vst.msk [vmem:[%s2686_s5 + $0x78] sm:$0xff] %vm860_vm4, %v1388_v41  ;;  %v1317_v29 = vmul.f32 %v1860_v40, %v1316_v46 }
 0x317   :  { %v1393_v37 = vadd.f32 %v1858_v3, %v1392_v47 }
 0x318   :  { %v1318_v53 = vadd.f32 %v1860_v40, %v1317_v29 }
 0x319   :  { %v1862_v32 = vpop.eup %1861  ;;  %v1397_v36 = vsel %vm1396_vm3, %v1858_v3, %v1393_v37  ;;  %v1109_v19 = vpop.xlane.xlu0 %1108 }
 0x31a   :  { %v1106_v35 = vpop.xlane.xlu2 %1105  ;;  %v1402_v11 = vsel %vm1399_vm6, %v1401_v25, %v1397_v36  ;;  %v1322_v38 = vsel %vm1321_vm7, %v1860_v40, %v1318_v53  ;;  %v1360_v9 = vmul.f32 %v1862_v32, %v1097_v15  ;;  %vm1365_vm9 = vweird.f32 %v1862_v32 }
 0x31b   :  { %v1403_v0 = vmul.f32 %v2429_v7, %v1402_v11  ;;  %v1327_v17 = vsel %vm1324_vm8, %v1326_v62, %v1322_v38  ;;  %1863 = vrcp.f32 %v1106_v35  ;;  %v1368_v7 = vand.u32 2147483647, %v1097_v15  ;;  %vm1366_vm11 = vmor %vm1364_vm10, %vm1365_vm9 }
 0x31c   :  { %v1328_v52 = vmul.f32 %v2427_v51, %v1327_v17  ;;  %v1361_v33 = vsub.f32 1.0, %v1360_v9  ;;  %1865 = vrcp.f32 %v1109_v19  ;;  %v1371_v51 = vor.u32 1.1754944e-38, %v1370_v13 }
 0x31d   :  { %1645 = vst.msk [vmem:[%s2686_s5 + $0x80] sm:$0xff] %vm860_vm4, %v1403_v0  ;;  %vm1369_vm12 = vcmp.eq.f32.partialorder %v1368_v7, 8.507059e+37  ;;  %v1415_v24 = vand.u32 2147483648, %v1106_v35  ;;  %v1413_v40 = vand.u32 2147483647, %v1106_v35  ;;  %vm1409_vm14 = vweird.f32 %v1106_v35 }
 0x31e   :  { %1640 = vst.msk [vmem:[%s2686_s5 + $0x58] sm:$0xff] %vm860_vm4, %v1328_v52  ;;  %v1362_v6 = vmul.f32 %v1862_v32, %v1361_v33  ;;  %v1430_v1 = vand.u32 2147483648, %v1109_v19  ;;  %v1428_v12 = vand.u32 2147483647, %v1109_v19  ;;  %vm1424_vm1 = vweird.f32 %v1109_v19 }
 0x31f   :  { %vm1414_vm2 = vcmp.eq.f32.partialorder %v1413_v40, 8.507059e+37 }
 0x320   :  { %v1363_v4 = vadd.f32 %v1862_v32, %v1362_v6  ;;  %v1431_v47 = vor.u32 1.1754944e-38, %v1430_v1  ;;  %vm1429_vm5 = vcmp.eq.f32.partialorder %v1428_v12, 8.507059e+37 }
 0x321   :  { %v1864_v20 = vpop.eup %1863  ;;  %v1112_v18 = vpop.xlane.xlu1 %1111 }
 0x322   :  { %v1367_v50 = vsel %vm1366_vm11, %v1862_v32, %v1363_v4  ;;  %v1405_v45 = vmul.f32 %v1864_v20, %v1106_v35  ;;  %1867 = vrcp.f32 %v1112_v18  ;;  %v1866_v44 = vpop.eup %1865  ;;  %vm1410_vm13 = vweird.f32 %v1864_v20 }
 0x323   :  { %v1372_v55 = vsel %vm1369_vm12, %v1371_v51, %v1367_v50  ;;  %v1420_v3 = vmul.f32 %v1866_v44, %v1109_v19  ;;  %vm1425_vm15 = vweird.f32 %v1866_v44  ;;  %vm1411_vm0 = vmor %vm1409_vm14, %vm1410_vm13  ;;  %v1445_v57 = vand.u32 2147483648, %v1112_v18 }
 0x324   :  { %v1373_v49 = vmul.f32 %v2442_v31, %v1372_v55  ;;  %v1406_v23 = vsub.f32 1.0, %v1405_v45  ;;  %v1416_v31 = vor.u32 1.1754944e-38, %v1415_v24  ;;  %vm1426_vm3 = vmor %vm1424_vm1, %vm1425_vm15  ;;  %v1443_v53 = vand.u32 2147483647, %v1112_v18 }
 0x325   :  { %v1421_v63 = vsub.f32 1.0, %v1420_v3  ;;  %vm1439_vm7 = vweird.f32 %v1112_v18 }
 0x326   :  { %1643 = vst.msk [vmem:[%s2686_s5 + $0x70] sm:$0xff] %vm860_vm4, %v1373_v49  ;;  %v1407_v30 = vmul.f32 %v1864_v20, %v1406_v23  ;;  %vm1444_vm9 = vcmp.eq.f32.partialorder %v1443_v53, 8.507059e+37 }
 0x327   :  { %v1422_v54 = vmul.f32 %v1866_v44, %v1421_v63 }
 0x328   :  { %v1868_v27 = vpop.eup %1867  ;;  %v1408_v15 = vadd.f32 %v1864_v20, %v1407_v30 }
 0x329   :  { %v1435_v8 = vmul.f32 %v1868_v27, %v1112_v18  ;;  %v1115_v41 = vpop.xlane.xlu2 %1114  ;;  %v1423_v10 = vadd.f32 %v1866_v44, %v1422_v54  ;;  %vm1440_vm6 = vweird.f32 %v1868_v27 }
 0x32a   :  { %v1412_v48 = vsel %vm1411_vm0, %v1864_v20, %v1408_v15  ;;  %1869 = vrcp.f32 %v1115_v41  ;;  %vm1441_vm8 = vmor %vm1439_vm7, %vm1440_vm6  ;;  %v1458_v52 = vand.u32 2147483647, %v1115_v41  ;;  %vm1454_vm11 = vweird.f32 %v1115_v41 }
 0x32b   :  { %v1417_v46 = vsel %vm1414_vm2, %v1416_v31, %v1412_v48  ;;  %v1436_v43 = vsub.f32 1.0, %v1435_v8  ;;  %v1427_v29 = vsel %vm1426_vm3, %v1866_v44, %v1423_v10 }
 0x32c   :  { %v1418_v22 = vmul.f32 %v2452_v61, %v1417_v46  ;;  %v1432_v37 = vsel %vm1429_vm5, %v1431_v47, %v1427_v29  ;;  %v1446_v61 = vor.u32 1.1754944e-38, %v1445_v57  ;;  %vm1459_vm13 = vcmp.eq.f32.partialorder %v1458_v52, 8.507059e+37 }
 0x32d   :  { %v1437_v25 = vmul.f32 %v1868_v27, %v1436_v43  ;;  %v1433_v32 = vmul.f32 %v2454_v59, %v1432_v37  ;;  %v1460_v59 = vand.u32 2147483648, %v1115_v41 }
 0x32e   :  { %1646 = vst.msk [vmem:[%s2686_s5 + $0x88] sm:$0xff] %vm860_vm4, %v1418_v22 }
 0x32f   :  { %v1438_v36 = vadd.f32 %v1868_v27, %v1437_v25  ;;  %1647 = vst.msk [vmem:[%s2686_s5 + $0x90] sm:$0xff] %vm860_vm4, %v1433_v32  ;;  %v1461_v6 = vor.u32 1.1754944e-38, %v1460_v59 }
 0x330   :  { %v1870_v62 = vpop.eup %1869 }
 0x331   :  { %v1442_v35 = vsel %vm1441_vm8, %v1868_v27, %v1438_v36  ;;  %v1450_v11 = vmul.f32 %v1870_v62, %v1115_v41  ;;  %v1118_v38 = vpop.xlane.xlu0 %1117  ;;  %vm1455_vm10 = vweird.f32 %v1870_v62 }
 0x332   :  { %v1447_v9 = vsel %vm1444_vm9, %v1446_v61, %v1442_v35  ;;  %1871 = vrcp.f32 %v1118_v38  ;;  %vm1456_vm12 = vmor %vm1454_vm11, %vm1455_vm10  ;;  %v1475_v50 = vand.u32 2147483648, %v1118_v38  ;;  %v1473_v44 = vand.u32 2147483647, %v1118_v38 }
 0x333   :  { %v1448_v19 = vmul.f32 %v2466_v5, %v1447_v9  ;;  %v1451_v0 = vsub.f32 1.0, %v1450_v11  ;;  %vm1469_vm15 = vweird.f32 %v1118_v38 }
 0x334   :  { %v1476_v23 = vor.u32 1.1754944e-38, %v1475_v50  ;;  %vm1474_vm1 = vcmp.eq.f32.partialorder %v1473_v44, 8.507059e+37 }
 0x335   :  { %1648 = vst.msk [vmem:[%s2686_s5 + $0x98] sm:$0xff] %vm860_vm4, %v1448_v19  ;;  %v1452_v17 = vmul.f32 %v1870_v62, %v1451_v0 }
 0x337   :  { %v1453_v33 = vadd.f32 %v1870_v62, %v1452_v17 }
 0x338   :  { %v1872_v13 = vpop.eup %1871 }
 0x339   :  { %v1457_v7 = vsel %vm1456_vm12, %v1870_v62, %v1453_v33  ;;  %v1465_v4 = vmul.f32 %v1872_v13, %v1118_v38  ;;  %v1121_v20 = vpop.xlane.xlu1 %1120  ;;  %vm1470_vm14 = vweird.f32 %v1872_v13 }
 0x33a   :  { %v1462_v5 = vsel %vm1459_vm13, %v1461_v6, %v1457_v7  ;;  %1873 = vrcp.f32 %v1121_v20  ;;  %vm1471_vm0 = vmor %vm1469_vm15, %vm1470_vm14  ;;  %v1490_v1 = vand.u32 2147483648, %v1121_v20  ;;  %v1488_v15 = vand.u32 2147483647, %v1121_v20 }
 0x33b   :  { %v1463_v51 = vmul.f32 %v2476_v60, %v1462_v5  ;;  %v1466_v18 = vsub.f32 1.0, %v1465_v4  ;;  %vm1484_vm3 = vweird.f32 %v1121_v20 }
 0x33c   :  { %v1491_v31 = vor.u32 1.1754944e-38, %v1490_v1  ;;  %vm1489_vm6 = vcmp.eq.f32.partialorder %v1488_v15, 8.507059e+37 }
 0x33d   :  { %1649 = vst.msk [vmem:[%s2686_s5 + $0xa0] sm:$0xff] %vm860_vm4, %v1463_v51  ;;  %v1467_v45 = vmul.f32 %v1872_v13, %v1466_v18 }
 0x33f   :  { %v1468_v55 = vadd.f32 %v1872_v13, %v1467_v45 }
 0x340   :  { %v1874_v49 = vpop.eup %1873 }
 0x341   :  { %v1472_v3 = vsel %vm1471_vm0, %v1872_v13, %v1468_v55  ;;  %v1480_v24 = vmul.f32 %v1874_v49, %v1121_v20  ;;  %v1124_v30 = vpop.xlane.xlu2 %1123  ;;  %vm1485_vm2 = vweird.f32 %v1874_v49 }
 0x342   :  { %v1477_v60 = vsel %vm1474_vm1, %v1476_v23, %v1472_v3  ;;  %1875 = vrcp.f32 %v1124_v30  ;;  %vm1486_vm5 = vmor %vm1484_vm3, %vm1485_vm2  ;;  %v1505_v47 = vand.u32 2147483648, %v1124_v30  ;;  %v1503_v22 = vand.u32 2147483647, %v1124_v30 }
 0x343   :  { %v1478_v40 = vmul.f32 %v2486_v39, %v1477_v60  ;;  %v1481_v63 = vsub.f32 1.0, %v1480_v24  ;;  %vm1499_vm8 = vweird.f32 %v1124_v30 }
 0x344   :  { %v1506_v37 = vor.u32 1.1754944e-38, %v1505_v47  ;;  %vm1504_vm10 = vcmp.eq.f32.partialorder %v1503_v22, 8.507059e+37 }
 0x345   :  { %1650 = vst.msk [vmem:[%s2686_s5 + $0xa8] sm:$0xff] %vm860_vm4, %v1478_v40  ;;  %v1482_v27 = vmul.f32 %v1874_v49, %v1481_v63 }
 0x347   :  { %v1483_v54 = vadd.f32 %v1874_v49, %v1482_v27 }
 0x348   :  { %v1876_v12 = vpop.eup %1875 }
 0x349   :  { %v1487_v8 = vsel %vm1486_vm5, %v1874_v49, %v1483_v54  ;;  %v1495_v41 = vmul.f32 %v1876_v12, %v1124_v30  ;;  %v1127_v48 = vpop.xlane.xlu0 %1126  ;;  %vm1500_vm7 = vweird.f32 %v1876_v12 }
 0x34a   :  { %v1492_v39 = vsel %vm1489_vm6, %v1491_v31, %v1487_v8  ;;  %1877 = vrcp.f32 %v1127_v48  ;;  %vm1501_vm9 = vmor %vm1499_vm8, %vm1500_vm7  ;;  %v1520_v61 = vand.u32 2147483648, %v1127_v48  ;;  %v1518_v11 = vand.u32 2147483647, %v1127_v48 }
 0x34b   :  { %v1493_v10 = vmul.f32 %v2496_v56, %v1492_v39  ;;  %v1496_v46 = vsub.f32 1.0, %v1495_v41  ;;  %vm1514_vm12 = vweird.f32 %v1127_v48 }
 0x34c   :  { %v1521_v19 = vor.u32 1.1754944e-38, %v1520_v61  ;;  %vm1519_vm14 = vcmp.eq.f32.partialorder %v1518_v11, 8.507059e+37 }
 0x34d   :  { %1651 = vst.msk [vmem:[%s2686_s5 + $0xb0] sm:$0xff] %vm860_vm4, %v1493_v10  ;;  %v1497_v43 = vmul.f32 %v1876_v12, %v1496_v46 }
 0x34f   :  { %v1498_v29 = vadd.f32 %v1876_v12, %v1497_v43 }
 0x350   :  { %v1878_v57 = vpop.eup %1877 }
 0x351   :  { %v1130_v25 = vpop.xlane.xlu1 %1129  ;;  %v1502_v53 = vsel %vm1501_vm9, %v1876_v12, %v1498_v29  ;;  %v1510_v32 = vmul.f32 %v1878_v57, %v1127_v48  ;;  %vm1515_vm11 = vweird.f32 %v1878_v57 }
 0x352   :  { %1879 = vrcp.f32 %v1130_v25  ;;  %v1507_v56 = vsel %vm1504_vm10, %v1506_v37, %v1502_v53  ;;  %vm1516_vm13 = vmor %vm1514_vm12, %vm1515_vm11  ;;  %v1535_v13 = vand.u32 2147483648, %v1130_v25  ;;  %v1533_v7 = vand.u32 2147483647, %v1130_v25 }
 0x353   :  { %v1508_v36 = vmul.f32 %v2506_v14, %v1507_v56  ;;  %v1511_v62 = vsub.f32 1.0, %v1510_v32  ;;  %vm1529_vm0 = vweird.f32 %v1130_v25 }
 0x354   :  { %v1536_v5 = vor.u32 1.1754944e-38, %v1535_v13  ;;  %vm1534_vm2 = vcmp.eq.f32.partialorder %v1533_v7, 8.507059e+37 }
 0x355   :  { %1652 = vst.msk [vmem:[%s2686_s5 + $0xb8] sm:$0xff] %vm860_vm4, %v1508_v36  ;;  %v1512_v35 = vmul.f32 %v1878_v57, %v1511_v62 }
 0x357   :  { %v1513_v9 = vadd.f32 %v1878_v57, %v1512_v35 }
 0x358   :  { %v1880_v38 = vpop.eup %1879 }
 0x359   :  { %v1525_v0 = vmul.f32 %v1880_v38, %v1130_v25  ;;  %v1133_v59 = vpop.xlane.xlu2 %1132  ;;  %v1517_v17 = vsel %vm1516_vm13, %v1878_v57, %v1513_v9  ;;  %vm1530_vm15 = vweird.f32 %v1880_v38 }
 0x35a   :  { %1881 = vrcp.f32 %v1133_v59  ;;  %v1522_v14 = vsel %vm1519_vm14, %v1521_v19, %v1517_v17  ;;  %vm1531_vm1 = vmor %vm1529_vm0, %vm1530_vm15  ;;  %v1550_v55 = vand.u32 2147483648, %v1133_v59  ;;  %v1548_v23 = vand.u32 2147483647, %v1133_v59 }
 0x35b   :  { %v1526_v52 = vsub.f32 1.0, %v1525_v0  ;;  %v1523_v33 = vmul.f32 %v2516_v42, %v1522_v14  ;;  %vm1544_vm5 = vweird.f32 %v1133_v59 }
 0x35c   :  { %v1551_v30 = vor.u32 1.1754944e-38, %v1550_v55  ;;  %vm1549_vm7 = vcmp.eq.f32.partialorder %v1548_v23, 8.507059e+37 }
 0x35d   :  { %v1527_v6 = vmul.f32 %v1880_v38, %v1526_v52  ;;  %1653 = vst.msk [vmem:[%s2686_s5 + $0xc0] sm:$0xff] %vm860_vm4, %v1523_v33 }
 0x35f   :  { %v1528_v4 = vadd.f32 %v1880_v38, %v1527_v6 }
 0x360   :  { %v1882_v20 = vpop.eup %1881 }
 0x361   :  { %v1532_v51 = vsel %vm1531_vm1, %v1880_v38, %v1528_v4  ;;  %v1540_v18 = vmul.f32 %v1882_v20, %v1133_v59  ;;  %v1136_v50 = vpop.xlane.xlu0 %1135  ;;  %vm1545_vm3 = vweird.f32 %v1882_v20 }
 0x362   :  { %v1537_v45 = vsel %vm1534_vm2, %v1536_v5, %v1532_v51  ;;  %1883 = vrcp.f32 %v1136_v50  ;;  %vm1546_vm6 = vmor %vm1544_vm5, %vm1545_vm3  ;;  %v1565_v15 = vand.u32 2147483648, %v1136_v50  ;;  %v1563_v12 = vand.u32 2147483647, %v1136_v50 }
 0x363   :  { %v1538_v42 = vmul.f32 %v2526_v26, %v1537_v45  ;;  %v1541_v44 = vsub.f32 1.0, %v1540_v18  ;;  %vm1559_vm9 = vweird.f32 %v1136_v50 }
 0x364   :  { %v1566_v41 = vor.u32 1.1754944e-38, %v1565_v15  ;;  %vm1564_vm11 = vcmp.eq.f32.partialorder %v1563_v12, 8.507059e+37 }
 0x365   :  { %1654 = vst.msk [vmem:[%s2686_s5 + $0xc8] sm:$0xff] %vm860_vm4, %v1538_v42  ;;  %v1542_v49 = vmul.f32 %v1882_v20, %v1541_v44 }
 0x367   :  { %v1543_v3 = vadd.f32 %v1882_v20, %v1542_v49 }
 0x368   :  { %v1884_v24 = vpop.eup %1883 }
 0x369   :  { %v1547_v60 = vsel %vm1546_vm6, %v1882_v20, %v1543_v3  ;;  %v1555_v40 = vmul.f32 %v1884_v24, %v1136_v50  ;;  %v1139_v63 = vpop.xlane.xlu1 %1138  ;;  %vm1560_vm8 = vweird.f32 %v1884_v24 }
 0x36a   :  { %v1552_v26 = vsel %vm1549_vm7, %v1551_v30, %v1547_v60  ;;  %1885 = vrcp.f32 %v1139_v63  ;;  %vm1561_vm10 = vmor %vm1559_vm9, %vm1560_vm8  ;;  %v1580_v43 = vand.u32 2147483648, %v1139_v63  ;;  %v1578_v29 = vand.u32 2147483647, %v1139_v63 }
 0x36b   :  { %v1553_v1 = vmul.f32 %v2536_v2, %v1552_v26  ;;  %v1556_v27 = vsub.f32 1.0, %v1555_v40  ;;  %vm1574_vm13 = vweird.f32 %v1139_v63 }
 0x36c   :  { %v1581_v25 = vor.u32 1.1754944e-38, %v1580_v43  ;;  %vm1579_vm15 = vcmp.eq.f32.partialorder %v1578_v29, 8.507059e+37 }
 0x36d   :  { %1655 = vst.msk [vmem:[%s2686_s5 + $0xd0] sm:$0xff] %vm860_vm4, %v1553_v1  ;;  %v1557_v54 = vmul.f32 %v1884_v24, %v1556_v27 }
 0x36f   :  { %v1558_v31 = vadd.f32 %v1884_v24, %v1557_v54 }
 0x370   :  { %v1886_v8 = vpop.eup %1885 }
 0x371   :  { %v1562_v48 = vsel %vm1561_vm10, %v1884_v24, %v1558_v31  ;;  %v1570_v39 = vmul.f32 %v1886_v8, %v1139_v63  ;;  %v1142_v10 = vpop.xlane.xlu2 %1141  ;;  %vm1575_vm12 = vweird.f32 %v1886_v8 }
 0x372   :  { %v1567_v2 = vsel %vm1564_vm11, %v1566_v41, %v1562_v48  ;;  %1887 = vrcp.f32 %v1142_v10  ;;  %vm1576_vm14 = vmor %vm1574_vm13, %vm1575_vm12  ;;  %v1595_v61 = vand.u32 2147483648, %v1142_v10  ;;  %v1593_v11 = vand.u32 2147483647, %v1142_v10 }
 0x373   :  { %v1568_v46 = vmul.f32 %v2546_v34, %v1567_v2  ;;  %v1571_v47 = vsub.f32 1.0, %v1570_v39  ;;  %vm1589_vm1 = vweird.f32 %v1142_v10 }
 0x374   :  { %v1596_v19 = vor.u32 1.1754944e-38, %v1595_v61  ;;  %vm1594_vm3 = vcmp.eq.f32.partialorder %v1593_v11, 8.507059e+37 }
 0x375   :  { %1656 = vst.msk [vmem:[%s2686_s5 + $0xd8] sm:$0xff] %vm860_vm4, %v1568_v46  ;;  %v1572_v22 = vmul.f32 %v1886_v8, %v1571_v47 }
 0x377   :  { %v1573_v57 = vadd.f32 %v1886_v8, %v1572_v22 }
 0x378   :  { %v1888_v37 = vpop.eup %1887 }
 0x379   :  { %v1577_v53 = vsel %vm1576_vm14, %v1886_v8, %v1573_v57  ;;  %v1585_v32 = vmul.f32 %v1888_v37, %v1142_v10  ;;  %v1145_v56 = vpop.xlane.xlu0 %1144  ;;  %vm1590_vm0 = vweird.f32 %v1888_v37 }
 0x37a   :  { %v1582_v34 = vsel %vm1579_vm15, %v1581_v25, %v1577_v53  ;;  %1889 = vrcp.f32 %v1145_v56  ;;  %vm1591_vm2 = vmor %vm1589_vm1, %vm1590_vm0  ;;  %v1610_v33 = vand.u32 2147483648, %v1145_v56  ;;  %v1608_v6 = vand.u32 2147483647, %v1145_v56 }
 0x37b   :  { %v1583_v36 = vmul.f32 %v2551_v28, %v1582_v34  ;;  %v1586_v62 = vsub.f32 1.0, %v1585_v32  ;;  %vm1604_vm6 = vweird.f32 %v1145_v56 }
 0x37c   :  { %v1611_v4 = vor.u32 1.1754944e-38, %v1610_v33  ;;  %vm1609_vm8 = vcmp.eq.f32.partialorder %v1608_v6, 8.507059e+37 }
 0x37d   :  { %1657 = vst.msk [vmem:[%s2686_s5 + $0xe0] sm:$0xff] %vm860_vm4, %v1583_v36  ;;  %v1587_v35 = vmul.f32 %v1888_v37, %v1586_v62 }
 0x37f   :  { %v1588_v38 = vadd.f32 %v1888_v37, %v1587_v35 }
 0x380   :  { %v1890_v9 = vpop.eup %1889 }
 0x381   :  { %v1592_v0 = vsel %vm1591_vm2, %v1888_v37, %v1588_v38  ;;  %v1600_v59 = vmul.f32 %v1890_v9, %v1145_v56  ;;  %vm1605_vm5 = vweird.f32 %v1890_v9 }
 0x382   :  { %v1597_v17 = vsel %vm1594_vm3, %v1596_v19, %v1592_v0  ;;  %v1148_v28 = vpop.xlane.xlu1 %1147  ;;  %vm1606_vm7 = vmor %vm1604_vm6, %vm1605_vm5 }
 0x383   :  { %v1598_v14 = vmul.f32 %v2556_v58, %v1597_v17  ;;  %v1601_v52 = vsub.f32 1.0, %v1600_v59  ;;  %1891 = vrcp.f32 %v1148_v28  ;;  %v1625_v45 = vand.u32 2147483648, %v1148_v28 }
 0x384   :  { %v1623_v44 = vand.u32 2147483647, %v1148_v28  ;;  %vm1619_vm10 = vweird.f32 %v1148_v28 }
 0x385   :  { %1658 = vst.msk [vmem:[%s2686_s5 + $0xe8] sm:$0xff] %vm860_vm4, %v1598_v14  ;;  %v1602_v13 = vmul.f32 %v1890_v9, %v1601_v52  ;;  %v1626_v49 = vor.u32 1.1754944e-38, %v1625_v45 }
 0x386   :  { %vm1624_vm12 = vcmp.eq.f32.partialorder %v1623_v44, 8.507059e+37 }
 0x387   :  { %v1603_v7 = vadd.f32 %v1890_v9, %v1602_v13 }
 0x389   :  { %v1892_v20 = vpop.eup %1891  ;;  %v1607_v5 = vsel %vm1606_vm7, %v1890_v9, %v1603_v7 }
 0x38a   :  { %v1612_v51 = vsel %vm1609_vm8, %v1611_v4, %v1607_v5  ;;  %v1615_v58 = vmul.f32 %v1892_v20, %v1148_v28  ;;  %vm1620_vm9 = vweird.f32 %v1892_v20 }
 0x38b   :  { %v1613_v18 = vmul.f32 %v2561_v21, %v1612_v51  ;;  %vm1621_vm11 = vmor %vm1619_vm10, %vm1620_vm9 }
 0x38c   :  { %v1616_v50 = vsub.f32 1.0, %v1615_v58 }
 0x38d   :  { %1659 = vst.msk [vmem:[%s2686_s5 + $0xf0] sm:$0xff] %vm860_vm4, %v1613_v18 }
 0x38e   :  { %v1617_v42 = vmul.f32 %v1892_v20, %v1616_v50 }
 0x390   :  { %v1618_v55 = vadd.f32 %v1892_v20, %v1617_v42 }
 0x392   :  { %v1622_v23 = vsel %vm1621_vm11, %v1892_v20, %v1618_v55 }
 0x393   :  { %v1627_v3 = vsel %vm1624_vm12, %v1626_v49, %v1622_v23 }
 0x394   :  { %v1628_v24 = vmul.f32 %v2569_v16, %v1627_v3 }
 0x396   :  { %1660 = vst.msk [vmem:[%s2686_s5 + $0xf8] sm:$0xff] %vm860_vm4, %v1628_v24 }

</bundles_post_ra>
